<compile_context>
chip_gen: v6e
topology: v6e:2x2x1
jax: 0.10.0
libtpu: 0.0.40
codegen_flags: <defaults>
</compile_context>

<pallas_src>
import functools

import jax
import jax.numpy as jnp
from jax.experimental import pallas as pl
from jax.experimental.pallas import tpu as pltpu


def _round_up(x, m):
    return (x + m - 1) // m * m


def _push_loss_kernel(bi_ref, bj_ref, fi_ref, fj_ref, li_ref, lj_ref,
                      sum_ref, cnt_ref, *, soft, margin, n_real, tile,
                      n_blk, has_pad):
    t = pl.program_id(0)
    bi = bi_ref[t]
    bj = bj_ref[t]

    @pl.when(t == 0)
    def _init():
        sum_ref[0] = jnp.float32(0.0)
        cnt_ref[0] = jnp.int32(0)

    # Cosine-similarity tile on the MXU (features pre-normalized + bf16-cast in
    # the wrapper): contract the LAST dims of both operands -> no transpose.
    sim = jax.lax.dot_general(
        fi_ref[...], fj_ref[...],
        dimension_numbers=(((1,), (1,)), ((), ())),
        preferred_element_type=jnp.float32)            # (TILE, TILE) f32

    if soft:
        losses = jax.nn.softplus(sim - 1.0)            # lean EUP path
    else:
        losses = jnp.float32(margin - 1.0) + sim

    # Pairs with different labels (broadcasted VPU compare, no transpose).
    valid = li_ref[...] != lj_ref[...]                 # (TILE,1) vs (1,TILE)
    if not soft:
        valid = jnp.logical_and(valid, losses > 0.0)   # hard-margin: loss > 0

    # Only diagonal blocks need the strict-lower-triangle mask; only last-row
    # blocks (when N is not a tile multiple) need the padded-row mask.
    needs_extra = bi == bj
    if has_pad:
        needs_extra = jnp.logical_or(needs_extra, bi == n_blk - 1)

    @pl.when(jnp.logical_not(needs_extra))
    def _interior():                                   # dominant block type
        sum_ref[0] += jnp.sum(jnp.where(valid, losses, jnp.float32(0.0)))
        cnt_ref[0] += jnp.sum(valid.astype(jnp.int32))

    @pl.when(needs_extra)
    def _edge():
        row_g = bi * tile + jax.lax.broadcasted_iota(jnp.int32, (tile, tile), 0)
        col_g = bj * tile + jax.lax.broadcasted_iota(jnp.int32, (tile, tile), 1)
        # row_g > col_g: strict lower triangle (always true off-diagonal, so
        # applying it unconditionally in this branch is harmless).
        # row_g < n_real: drops zero-padded rows (and, with the triangle,
        # padded columns, which only occur in the last diagonal block).
        v = jnp.logical_and(valid, row_g > col_g)
        v = jnp.logical_and(v, row_g < n_real)
        sum_ref[0] += jnp.sum(jnp.where(v, losses, jnp.float32(0.0)))
        cnt_ref[0] += jnp.sum(v.astype(jnp.int32))


def push_loss(features, labels, *, margin=0.5, soft_margin=True, tile=512,
              use_bf16=True):
    """JAX/Pallas equivalent of PushLoss(margin, soft_margin)(features, labels)."""
    n, d = features.shape
    d_pad = _round_up(max(d, 1), 128)
    itemsize = 2 if use_bf16 else 4

    # Tile sizing: multiple of 128, no bigger than the padded batch, capped so
    # double-buffered feature tiles + (tile,tile) f32 temporaries stay well
    # inside the default 32 MiB scoped VMEM (safe on v7x's 64 MiB physical).
    assert tile % 128 == 0, "tile must be a multiple of 128"
    tile = min(tile, _round_up(max(n, 1), 128))
    while tile > 128 and (4 * tile * d_pad * itemsize + 16 * tile * tile) > (24 << 20):
        tile = max(128, tile // 2 // 128 * 128)

    n_pad = _round_up(max(n, 1), tile)
    n_blk = n_pad // tile
    has_pad = n_pad != n

    # Normalize ONCE in the wrapper (matches F.normalize, eps=1e-12), pad, and
    # cast the MXU operands to bf16 (accumulation stays f32 inside the kernel).
    f32 = features.astype(jnp.float32)
    norm = jnp.sqrt(jnp.sum(f32 * f32, axis=-1, keepdims=True))
    fn = f32 / jnp.maximum(norm, 1e-12)
    feat_dtype = jnp.bfloat16 if use_bf16 else jnp.float32
    f_pad = jnp.zeros((n_pad, d_pad), feat_dtype).at[:n, :d].set(
        fn.astype(feat_dtype))

    lab = labels.astype(jnp.int32)
    lab_col = jnp.zeros((n_pad, 1), jnp.int32).at[:n, 0].set(lab)
    lab_row = jnp.zeros((1, n_pad), jnp.int32).at[0, :n].set(lab)

    # Row-major sweep of the lower triangle of block pairs: bi is constant over
    # runs of bj, so the fi tile's DMA is elided between consecutive steps.
    bi_list, bj_list = [], []
    for i in range(n_blk):
        for j in range(i + 1):
            bi_list.append(i)
            bj_list.append(j)
    n_steps = len(bi_list)
    bi_arr = jnp.array(bi_list, dtype=jnp.int32)
    bj_arr = jnp.array(bj_list, dtype=jnp.int32)

    kernel = functools.partial(
        _push_loss_kernel, soft=soft_margin, margin=float(margin),
        n_real=n, tile=tile, n_blk=n_blk, has_pad=has_pad)

    flops = 2 * n_steps * tile * tile * d_pad
    transcendentals = (n_steps * tile * tile) if soft_margin else 0
    bytes_accessed = ((n_blk + n_steps) * tile * d_pad * itemsize
                      + n_steps * tile * 8 + 8)

    grid_spec = pltpu.PrefetchScalarGridSpec(
        num_scalar_prefetch=2,
        grid=(n_steps,),
        in_specs=[
            pl.BlockSpec((tile, d_pad), lambda t, bi, bj: (bi[t], 0)),  # row tile
            pl.BlockSpec((tile, d_pad), lambda t, bi, bj: (bj[t], 0)),  # col tile
            pl.BlockSpec((tile, 1), lambda t, bi, bj: (bi[t], 0)),      # labels (col layout)
            pl.BlockSpec((1, tile), lambda t, bi, bj: (0, bj[t])),      # labels (row layout)
        ],
        out_specs=(
            pl.BlockSpec(memory_space=pltpu.MemorySpace.SMEM),
            pl.BlockSpec(memory_space=pltpu.MemorySpace.SMEM),
        ),
    )

    sum_l, cnt = pl.pallas_call(
        kernel,
        out_shape=(
            jax.ShapeDtypeStruct((1,), jnp.float32),
            jax.ShapeDtypeStruct((1,), jnp.int32),
        ),
        grid_spec=grid_spec,
        compiler_params=pltpu.CompilerParams(
            dimension_semantics=("arbitrary",)),
        cost_estimate=pl.CostEstimate(
            flops=flops, transcendentals=transcendentals,
            bytes_accessed=bytes_accessed),
    )(bi_arr, bj_arr, f_pad, f_pad, lab_col, lab_row)

    s = sum_l[0]
    c = cnt[0].astype(jnp.float32)
    # num_valid == 0 -> the reference returns the scalar 0; here 0.0.
    return jnp.where(c > 0, s / jnp.maximum(c, 1.0), 0.0)


def _push_loss_ref(features, labels, *, margin=0.5, soft_margin=True,
                   quantize_bf16=False):
    """Pure-JAX reference. quantize_bf16=True mirrors the kernel's bf16 operands."""
    f = features.astype(jnp.float32)
    fn = f / jnp.maximum(jnp.linalg.norm(f, axis=-1, keepdims=True), 1e-12)
    if quantize_bf16:
        fn = fn.astype(jnp.bfloat16).astype(jnp.float32)
    sim = fn @ fn.T
    n = f.shape[0]
    diff = labels[:, None] != labels[None, :]
    tri = jnp.tril(jnp.ones((n, n), bool), k=-1)
    valid = jnp.logical_and(diff, tri)
    if soft_margin:
        losses = jax.nn.softplus(sim - 1.0)
    else:
        losses = margin - (1.0 - sim)
        valid = jnp.logical_and(valid, losses > 0.0)
    validf = valid.astype(jnp.float32)
    cnt = jnp.sum(validf)
    return jnp.where(cnt > 0, jnp.sum(losses * validf) / jnp.maximum(cnt, 1.0), 0.0)


if __name__ == "__main__":
    key = jax.random.PRNGKey(0)
    kf, kl = jax.random.split(key)

    # Small shapes consistent with the module: batch=8 embeddings of dim 32.
    N, D = 8, 32
    features = jax.random.normal(kf, (N, D), dtype=jnp.float32)
    labels = jax.random.randint(kl, (N,), 0, 4, dtype=jnp.int32)

    out_soft = push_loss(features, labels, soft_margin=True)
    jax.block_until_ready(out_soft)
    out_hard = push_loss(features, labels, soft_margin=False)
    jax.block_until_ready(out_hard)
    out_hard1 = push_loss(features, labels, soft_margin=False, margin=1.0)
    jax.block_until_ready(out_hard1)

    # Structural check vs a reference using the same bf16-quantized features.
    ref_soft_q = _push_loss_ref(features, labels, soft_margin=True, quantize_bf16=True)
    ref_hard_q = _push_loss_ref(features, labels, soft_margin=False, quantize_bf16=True)
    ref_hard1_q = _push_loss_ref(features, labels, soft_margin=False, margin=1.0,
                                 quantize_bf16=True)
    assert jnp.allclose(out_soft, ref_soft_q, atol=1e-4, rtol=1e-4), (out_soft, ref_soft_q)
    assert jnp.allclose(out_hard, ref_hard_q, atol=1e-4, rtol=1e-4), (out_hard, ref_hard_q)
    assert jnp.allclose(out_hard1, ref_hard1_q, atol=1e-4, rtol=1e-4), (out_hard1, ref_hard1_q)

    # bf16-matmul accuracy sanity check against the full-f32 reference.
    ref_soft = _push_loss_ref(features, labels, soft_margin=True)
    assert jnp.allclose(out_soft, ref_soft, atol=5e-3, rtol=5e-3), (out_soft, ref_soft)

    # Exact f32 path matches the f32 reference tightly.
    out_soft_f32 = push_loss(features, labels, soft_margin=True, use_bf16=False)
    jax.block_until_ready(out_soft_f32)
    assert jnp.allclose(out_soft_f32, ref_soft, atol=1e-5), (out_soft_f32, ref_soft)

    # Larger ragged shape exercising the triangular multi-block sweep (3 row
    # blocks of 128 -> 6 grid steps), padding, and the mask specialization.
    kf2, kl2 = jax.random.split(jax.random.PRNGKey(1))
    N2, D2 = 300, 96
    features2 = jax.random.normal(kf2, (N2, D2), dtype=jnp.float32)
    labels2 = jax.random.randint(kl2, (N2,), 0, 16, dtype=jnp.int32)

    out2_soft = push_loss(features2, labels2, soft_margin=True, tile=128)
    jax.block_until_ready(out2_soft)
    out2_hard = push_loss(features2, labels2, soft_margin=False, tile=128)
    jax.block_until_ready(out2_hard)
    ref2_soft_q = _push_loss_ref(features2, labels2, soft_margin=True, quantize_bf16=True)
    ref2_hard_q = _push_loss_ref(features2, labels2, soft_margin=False, quantize_bf16=True)
    assert jnp.allclose(out2_soft, ref2_soft_q, atol=1e-4, rtol=1e-4), (out2_soft, ref2_soft_q)
    assert jnp.allclose(out2_hard, ref2_hard_q, atol=1e-4, rtol=1e-4), (out2_hard, ref2_hard_q)

    ref2_soft = _push_loss_ref(features2, labels2, soft_margin=True)
    assert jnp.allclose(out2_soft, ref2_soft, atol=5e-3, rtol=5e-3), (out2_soft, ref2_soft)

    # Default tile (single 384-wide block after the batch-size cap) also works.
    out2_soft_big = push_loss(features2, labels2, soft_margin=True)
    jax.block_until_ready(out2_soft_big)
    assert jnp.allclose(out2_soft_big, ref2_soft_q, atol=1e-4, rtol=1e-4), (
        out2_soft_big, ref2_soft_q)

    print("KERNEL_OK")
</pallas_src>

<mosaic_0001>
module attributes {stable_mosaic.version = 11 : i64} {
  func.func @_push_loss_kernel(%arg0: i32, %arg1: memref<1xi32, #tpu.memory_space<smem>>, %arg2: memref<1xi32, #tpu.memory_space<smem>>, %arg3: memref<128x128xbf16, #tpu.memory_space<vmem>>, %arg4: memref<128x128xbf16, #tpu.memory_space<vmem>>, %arg5: memref<128x1xi32, #tpu.memory_space<vmem>>, %arg6: memref<1x128xi32, #tpu.memory_space<vmem>>, %arg7: memref<1xf32, #tpu.memory_space<smem>>, %arg8: memref<1xi32, #tpu.memory_space<smem>>) attributes {dimension_semantics = [#tpu.dimension_semantics<arbitrary>], iteration_bounds = array<i64: 1>, scalar_prefetch = 2 : i64, scratch_operands = 0 : i64, tpu.core_type = #tpu.core_type<tc>, window_params = [{transform_indices = @transform_0, window_bounds = array<i64: 128, 128>}, {transform_indices = @transform_1, window_bounds = array<i64: 128, 128>}, {transform_indices = @transform_2, window_bounds = array<i64: 128, 1>}, {transform_indices = @transform_3, window_bounds = array<i64: 1, 128>}, {transform_indices = @transform_4, window_bounds = array<i64: 1>}, {transform_indices = @transform_5, window_bounds = array<i64: 1>}]} {
    %0 = arith.index_cast %arg0 : i32 to index
    %1 = memref.load %arg1[%0] : memref<1xi32, #tpu.memory_space<smem>>
    %2 = arith.index_cast %arg0 : i32 to index
    %3 = memref.load %arg2[%2] : memref<1xi32, #tpu.memory_space<smem>>
    %c0_i32 = arith.constant 0 : i32
    %4 = arith.cmpi eq, %arg0, %c0_i32 : i32
    %5 = arith.extui %4 : i1 to i32
    %c0_i32_0 = arith.constant 0 : i32
    %6 = arith.cmpi ne, %5, %c0_i32_0 : i32
    scf.if %6 {
      %cst_14 = arith.constant 0.000000e+00 : f32
      %c0_15 = arith.constant 0 : index
      %39 = memref.load %arg7[%c0_15] : memref<1xf32, #tpu.memory_space<smem>>
      memref.store %cst_14, %arg7[%c0_15] : memref<1xf32, #tpu.memory_space<smem>>
      %c0_i32_16 = arith.constant 0 : i32
      %c0_17 = arith.constant 0 : index
      %40 = memref.load %arg8[%c0_17] : memref<1xi32, #tpu.memory_space<smem>>
      memref.store %c0_i32_16, %arg8[%c0_17] : memref<1xi32, #tpu.memory_space<smem>>
    } else {
    }
    %c0 = arith.constant 0 : index
    %c0_1 = arith.constant 0 : index
    %7 = vector.load %arg3[%c0, %c0_1] : memref<128x128xbf16, #tpu.memory_space<vmem>>, vector<128x128xbf16>
    %c0_2 = arith.constant 0 : index
    %c0_3 = arith.constant 0 : index
    %8 = vector.load %arg4[%c0_2, %c0_3] : memref<128x128xbf16, #tpu.memory_space<vmem>>, vector<128x128xbf16>
    %cst = arith.constant dense<0.000000e+00> : vector<128x128xf32>
    %9 = tpu.matmul %7, %8, %cst {dimension_numbers = #tpu.dot_dimension_numbers<[1], [1], [0], [0], [0, 0, 1, 0], [], []>} : vector<128x128xbf16>, vector<128x128xbf16>, vector<128x128xf32> -> vector<128x128xf32>
    %cst_4 = arith.constant 1.000000e+00 : f32
    %10 = vector.broadcast %cst_4 : f32 to vector<128x128xf32>
    %11 = arith.subf %9, %10 : vector<128x128xf32>
    %cst_5 = arith.constant 0.000000e+00 : f32
    %12 = vector.broadcast %cst_5 : f32 to vector<128x128xf32>
    %13 = arith.maximumf %11, %12 : vector<128x128xf32>
    %14 = vector.broadcast %cst_5 : f32 to vector<128x128xf32>
    %15 = arith.subf %11, %14 : vector<128x128xf32>
    %16 = arith.cmpf one, %15, %15 : vector<128x128xf32>
    %17 = vector.broadcast %cst_5 : f32 to vector<128x128xf32>
    %18 = arith.addf %11, %17 : vector<128x128xf32>
    %19 = math.absf %15 : vector<128x128xf32>
    %cst_6 = arith.constant 0.000000e+00 : f32
    %20 = vector.broadcast %cst_6 : f32 to vector<128x128xf32>
    %21 = arith.subf %20, %19 : vector<128x128xf32>
    %22 = math.exp %21 : vector<128x128xf32>
    %23 = math.log1p %22 : vector<128x128xf32>
    %24 = arith.addf %13, %23 : vector<128x128xf32>
    %25 = arith.select %16, %18, %24 : vector<128x128xi1>, vector<128x128xf32>
    %c0_7 = arith.constant 0 : index
    %c0_8 = arith.constant 0 : index
    %26 = vector.load %arg5[%c0_7, %c0_8] : memref<128x1xi32, #tpu.memory_space<vmem>>, vector<128x1xi32>
    %c0_9 = arith.constant 0 : index
    %c0_10 = arith.constant 0 : index
    %27 = vector.load %arg6[%c0_9, %c0_10] : memref<1x128xi32, #tpu.memory_space<vmem>>, vector<1x128xi32>
    %28 = vector.broadcast %26 : vector<128x1xi32> to vector<128x128xi32>
    %29 = vector.broadcast %27 : vector<1x128xi32> to vector<128x128xi32>
    %30 = arith.cmpi ne, %28, %29 : vector<128x128xi32>
    %31 = arith.cmpi eq, %1, %3 : i32
    %c0_i32_11 = arith.constant 0 : i32
    %32 = arith.cmpi eq, %1, %c0_i32_11 : i32
    %33 = arith.ori %31, %32 : i1
    %true = arith.constant true
    %34 = arith.xori %33, %true : i1
    %35 = arith.extui %34 : i1 to i32
    %c0_i32_12 = arith.constant 0 : i32
    %36 = arith.cmpi ne, %35, %c0_i32_12 : i32
    scf.if %36 {
      %c0_14 = arith.constant 0 : index
      %39 = memref.load %arg7[%c0_14] : memref<1xf32, #tpu.memory_space<smem>>
      %cst_15 = arith.constant 0.000000e+00 : f32
      %40 = vector.broadcast %cst_15 : f32 to vector<128x128xf32>
      %41 = arith.select %30, %25, %40 : vector<128x128xi1>, vector<128x128xf32>
      %42 = vector.shape_cast %41 : vector<128x128xf32> to vector<1x128x128xf32>
      %cst_16 = arith.constant dense<0.000000e+00> : vector<1xf32>
      %43 = vector.multi_reduction <add>, %42, %cst_16 [1, 2] : vector<1x128x128xf32> to vector<1xf32>
      %44 = vector.shape_cast %43 : vector<1xf32> to vector<1x1x1xf32>
      %45 = vector.extract %44[0, 0, 0] : f32 from vector<1x1x1xf32>
      %46 = arith.addf %39, %45 : f32
      %c0_17 = arith.constant 0 : index
      %47 = memref.load %arg7[%c0_17] : memref<1xf32, #tpu.memory_space<smem>>
      memref.store %46, %arg7[%c0_17] : memref<1xf32, #tpu.memory_space<smem>>
      %c0_18 = arith.constant 0 : index
      %48 = memref.load %arg8[%c0_18] : memref<1xi32, #tpu.memory_space<smem>>
      %49 = arith.extui %30 : vector<128x128xi1> to vector<128x128xi32>
      %50 = vector.shape_cast %49 : vector<128x128xi32> to vector<1x128x128xi32>
      %cst_19 = arith.constant dense<0> : vector<1xi32>
      %51 = vector.multi_reduction <add>, %50, %cst_19 [1, 2] : vector<1x128x128xi32> to vector<1xi32>
      %52 = vector.shape_cast %51 : vector<1xi32> to vector<1x1x1xi32>
      %53 = vector.extract %52[0, 0, 0] : i32 from vector<1x1x1xi32>
      %54 = arith.addi %48, %53 : i32
      %c0_20 = arith.constant 0 : index
      %55 = memref.load %arg8[%c0_20] : memref<1xi32, #tpu.memory_space<smem>>
      memref.store %54, %arg8[%c0_20] : memref<1xi32, #tpu.memory_space<smem>>
    } else {
    }
    %37 = arith.extui %33 : i1 to i32
    %c0_i32_13 = arith.constant 0 : i32
    %38 = arith.cmpi ne, %37, %c0_i32_13 : i32
    scf.if %38 {
      %c128_i32 = arith.constant 128 : i32
      %39 = arith.muli %1, %c128_i32 : i32
      %40 = tpu.iota {dimensions = array<i32: 0>} : vector<128x128xi32>
      %41 = vector.broadcast %39 : i32 to vector<128x128xi32>
      %42 = arith.addi %41, %40 : vector<128x128xi32>
      %c128_i32_14 = arith.constant 128 : i32
      %43 = arith.muli %3, %c128_i32_14 : i32
      %44 = tpu.iota {dimensions = array<i32: 1>} : vector<128x128xi32>
      %45 = vector.broadcast %43 : i32 to vector<128x128xi32>
      %46 = arith.addi %45, %44 : vector<128x128xi32>
      %47 = arith.cmpi sgt, %42, %46 : vector<128x128xi32>
      %48 = arith.andi %30, %47 : vector<128x128xi1>
      %c8_i32 = arith.constant 8 : i32
      %49 = vector.broadcast %c8_i32 : i32 to vector<128x128xi32>
      %50 = arith.cmpi slt, %42, %49 : vector<128x128xi32>
      %51 = arith.andi %48, %50 : vector<128x128xi1>
      %c0_15 = arith.constant 0 : index
      %52 = memref.load %arg7[%c0_15] : memref<1xf32, #tpu.memory_space<smem>>
      %cst_16 = arith.constant 0.000000e+00 : f32
      %53 = vector.broadcast %cst_16 : f32 to vector<128x128xf32>
      %54 = arith.select %51, %25, %53 : vector<128x128xi1>, vector<128x128xf32>
      %55 = vector.shape_cast %54 : vector<128x128xf32> to vector<1x128x128xf32>
      %cst_17 = arith.constant dense<0.000000e+00> : vector<1xf32>
      %56 = vector.multi_reduction <add>, %55, %cst_17 [1, 2] : vector<1x128x128xf32> to vector<1xf32>
      %57 = vector.shape_cast %56 : vector<1xf32> to vector<1x1x1xf32>
      %58 = vector.extract %57[0, 0, 0] : f32 from vector<1x1x1xf32>
      %59 = arith.addf %52, %58 : f32
      %c0_18 = arith.constant 0 : index
      %60 = memref.load %arg7[%c0_18] : memref<1xf32, #tpu.memory_space<smem>>
      memref.store %59, %arg7[%c0_18] : memref<1xf32, #tpu.memory_space<smem>>
      %c0_19 = arith.constant 0 : index
      %61 = memref.load %arg8[%c0_19] : memref<1xi32, #tpu.memory_space<smem>>
      %62 = arith.extui %51 : vector<128x128xi1> to vector<128x128xi32>
      %63 = vector.shape_cast %62 : vector<128x128xi32> to vector<1x128x128xi32>
      %cst_20 = arith.constant dense<0> : vector<1xi32>
      %64 = vector.multi_reduction <add>, %63, %cst_20 [1, 2] : vector<1x128x128xi32> to vector<1xi32>
      %65 = vector.shape_cast %64 : vector<1xi32> to vector<1x1x1xi32>
      %66 = vector.extract %65[0, 0, 0] : i32 from vector<1x1x1xi32>
      %67 = arith.addi %61, %66 : i32
      %c0_21 = arith.constant 0 : index
      %68 = memref.load %arg8[%c0_21] : memref<1xi32, #tpu.memory_space<smem>>
      memref.store %67, %arg8[%c0_21] : memref<1xi32, #tpu.memory_space<smem>>
    } else {
    }
    return
  }
  func.func @transform_0(%arg0: i32, %arg1: memref<1xi32, #tpu.memory_space<smem>>, %arg2: memref<1xi32, #tpu.memory_space<smem>>) -> (i32, i32) {
    %0 = arith.index_cast %arg0 : i32 to index
    %1 = memref.load %arg1[%0] : memref<1xi32, #tpu.memory_space<smem>>
    %c0_i32 = arith.constant 0 : i32
    %c0_i32_0 = arith.constant 0 : i32
    return %1, %c0_i32 : i32, i32
  }
  func.func @transform_1(%arg0: i32, %arg1: memref<1xi32, #tpu.memory_space<smem>>, %arg2: memref<1xi32, #tpu.memory_space<smem>>) -> (i32, i32) {
    %0 = arith.index_cast %arg0 : i32 to index
    %1 = memref.load %arg2[%0] : memref<1xi32, #tpu.memory_space<smem>>
    %c0_i32 = arith.constant 0 : i32
    %c0_i32_0 = arith.constant 0 : i32
    return %1, %c0_i32 : i32, i32
  }
  func.func @transform_2(%arg0: i32, %arg1: memref<1xi32, #tpu.memory_space<smem>>, %arg2: memref<1xi32, #tpu.memory_space<smem>>) -> (i32, i32) {
    %0 = arith.index_cast %arg0 : i32 to index
    %1 = memref.load %arg1[%0] : memref<1xi32, #tpu.memory_space<smem>>
    %c0_i32 = arith.constant 0 : i32
    %c0_i32_0 = arith.constant 0 : i32
    return %1, %c0_i32 : i32, i32
  }
  func.func @transform_3(%arg0: i32, %arg1: memref<1xi32, #tpu.memory_space<smem>>, %arg2: memref<1xi32, #tpu.memory_space<smem>>) -> (i32, i32) {
    %0 = arith.index_cast %arg0 : i32 to index
    %1 = memref.load %arg2[%0] : memref<1xi32, #tpu.memory_space<smem>>
    %c0_i32 = arith.constant 0 : i32
    %c0_i32_0 = arith.constant 0 : i32
    return %c0_i32, %1 : i32, i32
  }
  func.func @transform_4(%arg0: i32, %arg1: memref<1xi32, #tpu.memory_space<smem>>, %arg2: memref<1xi32, #tpu.memory_space<smem>>) -> i32 {
    %c0_i32 = arith.constant 0 : i32
    %c0_i32_0 = arith.constant 0 : i32
    return %c0_i32 : i32
  }
  func.func @transform_5(%arg0: i32, %arg1: memref<1xi32, #tpu.memory_space<smem>>, %arg2: memref<1xi32, #tpu.memory_space<smem>>) -> i32 {
    %c0_i32 = arith.constant 0 : i32
    %c0_i32_0 = arith.constant 0 : i32
    return %c0_i32 : i32
  }
}

</mosaic_0001>

<bundles_post_ra>
// kernel: tpu_custom_call.1
= control target key start
LH: loop header
LB: loop body
LE: loop exit
PB: predicated region body
PF: predicated region fallthrough
CT: control target
= control target key end

     0   :  { %15 = vsyncpa [#allocation6], 0  ;;  %s2267_s0 = inlined_call_operand.<no memory space> [shape: s32[1], index: 0, kind: input, shape index: {}]   ;;  %s2268_s1 = inlined_call_operand.<no memory space> [shape: s32[1], index: 1, kind: input, shape index: {}]   ;;  %s2269_s2 = inlined_call_operand.vmem [shape: bf16[128,128], index: 2, kind: input, shape index: {}]   ;;  %s2270_s3 = inlined_call_operand.vmem [shape: bf16[128,128], index: 3, kind: input, shape index: {}]   ;;  %s2271_s4 = inlined_call_operand.vmem [shape: s32[128,1], index: 4, kind: input, shape index: {}]   ;;  %s2272_s5 = inlined_call_operand.vmem [shape: s32[1,128], index: 5, kind: input, shape index: {}]   ;;  %s2273_s6 = inlined_call_operand.hbm [shape: f32[1], index: 6, kind: output, shape index: {0}]   ;;  %s2274_s7 = inlined_call_operand.hbm [shape: s32[1], index: 7, kind: output, shape index: {1}]  }
   0x1   :  { %16 = vsyncpa [#allocation8], 0  ;;  %s1087_s26 = sshll.u32 %s2268_s1, 4  ;;  %s1307_s27 = smov 0.0   ;;  %v1308_v0 = vmov 0  }
   0x2   :  { %p86_p0 = scmp.lt.s32.totalorder %s1087_s26, 15  ;;  %113 = sst [smem:[#allocation5]] %s1307_s27  ;;  %1206 = vset.pattern.permute.xlu1 %v1308_v0  ;;  %1205 = vset.pattern.permute.xlu0 %v1308_v0 }
   0x3   :  { %s1085_s30 = sshll.u32 %s2267_s0, 4  ;;  %s1309_s8 = smov 0  }
   0x4   :  { %s2437_s26 = smov (!%p86_p0, %s1087_s26), 15  ;;  %115 = sst [smem:[#allocation7]] %s1309_s8 }
   0x5   :  { %p78_p1 = scmp.lt.s32.totalorder %s1085_s30, 15  ;;  %s1088_s9 = sshll.u32 %s2437_s26, 2 }
   0x6   :  { %s1363_s12 = scalar_lea.vmem %s2270_s3, %s1088_s9  ;;  %p101_p2 = scmp.lt.s32.totalorder %s2268_s1, 0 }
   0x7   :  { %v1207_v1 = vld [vmem:[%s1363_s12 + $0x38] sm:$0xff]   ;;  %s2439_s30 = smov (!%p78_p1, %s1085_s30), 15  ;;  %v1208_v2 = vld [vmem:[%s1363_s12 + $0x30] sm:$0xff]   ;;  %v1209_v3 = vld [vmem:[%s1363_s12 + $0x28] sm:$0xff]   ;;  %p730_p3 = scmp.eq.s32.totalorder %s2267_s0, %s2268_s1 }
   0x8   :  { %1142 = vmatprep.subr.bf16.mxu0 %v1207_v1  ;;  %1174 = vmatprep.subr.bf16.mxu1 %v1207_v1  ;;  %s1086_s13 = sshll.u32 %s2439_s30, 2  ;;  %s1090_s3 = sshll.u32 %s2439_s30, 3  ;;  %v1210_v6 = vld [vmem:[%s1363_s12 + $0x20] sm:$0xff]   ;;  %v1211_v13 = vld [vmem:[%s1363_s12 + $0x18] sm:$0xff]   ;;  %v1212_v18 = vld [vmem:[%s1363_s12 + $0x10] sm:$0xff]  }
   0x9   :  { %1143 = vmatpush3.bf16.xpose.msra.mxu0 %v1207_v1  ;;  %1182 = vmatpush3.bf16.xpose.msra.mxu1 %v1207_v1  ;;  %s1370_s16 = scalar_lea.vmem %s2269_s2, %s1086_s13  ;;  %s1378_s19 = scalar_lea.vmem %s2271_s4, %s1090_s3  ;;  %v1213_v23 = vld [vmem:[%s1363_s12 + $0x8] sm:$0xff]   ;;  %v1214_v26 = vld [vmem:[%s1363_s12] sm:$0xff]  }
   0xa   :  { %1144 = vmatprep.subr.bf16.mxu0 %v1208_v2  ;;  %1175 = vmatprep.subr.bf16.mxu1 %v1208_v2  ;;  %v1215_v4 = vld [vmem:[%s1370_s16] sm:$0xff]   ;;  %v647_v7 = vld [vmem:[%s1378_s19 + $0x10] sm:$0xff]  ;;  %v648_v9 = vld [vmem:[%s1378_s19 + $0x18] sm:$0xff]  ;;  %s102_s22 = scalar_select %p101_p2, %s2268_s1, 0 }
   0xb   :  { %v1216_v5 = vld [vmem:[%s1370_s16 + $0x20] sm:$0xff]   ;;  %1158 = vmatprep.mubr.bf16.mxu0 %v1215_v4  ;;  %669 = vperm.xlu1 %1206, %v647_v7   ;;  %v646_v10 = vld [vmem:[%s1378_s19 + $0x8] sm:$0xff]  ;;  %v652_v14 = vld [vmem:[%s1378_s19 + $0x38] sm:$0xff]  ;;  %p731_p4 = scmp.eq.s32.totalorder %s2267_s0, 0 }
   0xc   :  { %1166 = vmatprep.mubr.bf16.mxu1 %v1216_v5  ;;  %v645_v8 = vld [vmem:[%s1378_s19] sm:$0xff]  ;;  %v650_v11 = vld [vmem:[%s1378_s19 + $0x28] sm:$0xff]  ;;  %v651_v15 = vld [vmem:[%s1378_s19 + $0x30] sm:$0xff]  ;;  %s103_s25 = scalar_lea.vmem %s2272_s5, %s102_s22 }
   0xd   :  { %663 = vperm.xlu0 %1205, %v645_v8   ;;  %v649_v12 = vld [vmem:[%s1378_s19 + $0x20] sm:$0xff]  ;;  %v654_v16 = vld [vmem:[%s1378_s19 + $0x48] sm:$0xff]  ;;  %v656_v19 = vld [vmem:[%s1378_s19 + $0x58] sm:$0xff]  ;;  %p1491_p5 = por %p731_p4, %p730_p3 }
   0xe   :  { %v653_v17 = vld [vmem:[%s1378_s19 + $0x40] sm:$0xff]  ;;  %v655_v20 = vld [vmem:[%s1378_s19 + $0x50] sm:$0xff]  ;;  %v658_v21 = vld [vmem:[%s1378_s19 + $0x68] sm:$0xff]  ;;  %s1124_s11 = sshll.u32 (%p1491_p5), %s2267_s0, 7  ;;  %s1125_s14 = sshll.u32 (%p1491_p5), %s2268_s1, 7 }
   0xf   :  { %672 = vperm.xlu1 %1206, %v648_v9   ;;  %v657_v22 = vld [vmem:[%s1378_s19 + $0x60] sm:$0xff]  ;;  %v660_v24 = vld [vmem:[%s1378_s19 + $0x78] sm:$0xff]  ;;  %v659_v25 = vld [vmem:[%s1378_s19 + $0x70] sm:$0xff]  ;;  %s840_s0 = sld [smem:[#allocation5]] (%p1491_p5) }
  0x10   :  { %v1217_v27 = vld [vmem:[%s1370_s16 + $0x8] sm:$0xff]   ;;  %v1219_v29 = vld [vmem:[%s1370_s16 + $0x10] sm:$0xff]   ;;  %v1221_v31 = vld [vmem:[%s1370_s16 + $0x18] sm:$0xff]   ;;  %s884_s1 = sld [smem:[#allocation7]] (%p1491_p5) }
  0x11   :  { %1145 = vmatpush3.bf16.xpose.msra.mxu0 %v1208_v2  ;;  %1183 = vmatpush3.bf16.xpose.msra.mxu1 %v1208_v2  ;;  %v1218_v28 = vld [vmem:[%s1370_s16 + $0x28] sm:$0xff]   ;;  %v1220_v30 = vld [vmem:[%s1370_s16 + $0x30] sm:$0xff]   ;;  %v1222_v32 = vld [vmem:[%s1370_s16 + $0x38] sm:$0xff]  }
  0x12   :  { %1146 = vmatprep.subr.bf16.mxu0 %v1209_v3  ;;  %1176 = vmatprep.subr.bf16.mxu1 %v1209_v3  ;;  %v1420_v35 = vld [vmem:[%s103_s25] ss:$0 sm:$0xff] }
  0x13   :  { %666 = vperm.xlu0 %1205, %v646_v10   ;;  %678 = vperm.xlu1 %1206, %v650_v11  }
  0x17   :  { %675 = vperm.xlu0 %1205, %v649_v12   ;;  %684 = vperm.xlu1 %1206, %v652_v14  }
  0x19   :  { %1147 = vmatpush3.bf16.xpose.msra.mxu0 %v1209_v3  ;;  %1184 = vmatpush3.bf16.xpose.msra.mxu1 %v1209_v3 }
  0x1a   :  { %1148 = vmatprep.subr.bf16.mxu0 %v1210_v6  ;;  %1177 = vmatprep.subr.bf16.mxu1 %v1210_v6 }
  0x1b   :  { %681 = vperm.xlu0 %1205, %v651_v15   ;;  %690 = vperm.xlu1 %1206, %v654_v16  }
  0x1f   :  { %687 = vperm.xlu0 %1205, %v653_v17   ;;  %696 = vperm.xlu1 %1206, %v656_v19  }
  0x21   :  { %1149 = vmatpush3.bf16.xpose.msra.mxu0 %v1210_v6  ;;  %1185 = vmatpush3.bf16.xpose.msra.mxu1 %v1210_v6 }
  0x22   :  { %1150 = vmatprep.subr.bf16.mxu0 %v1211_v13  ;;  %1178 = vmatprep.subr.bf16.mxu1 %v1211_v13 }
  0x23   :  { %693 = vperm.xlu0 %1205, %v655_v20   ;;  %702 = vperm.xlu1 %1206, %v658_v21  }
  0x27   :  { %699 = vperm.xlu0 %1205, %v657_v22   ;;  %708 = vperm.xlu1 %1206, %v660_v24  }
  0x29   :  { %1151 = vmatpush3.bf16.xpose.msra.mxu0 %v1211_v13  ;;  %1186 = vmatpush3.bf16.xpose.msra.mxu1 %v1211_v13 }
  0x2a   :  { %1152 = vmatprep.subr.bf16.mxu0 %v1212_v18  ;;  %1179 = vmatprep.subr.bf16.mxu1 %v1212_v18 }
  0x2b   :  { %705 = vperm.xlu0 %1205, %v659_v25  }
  0x31   :  { %1153 = vmatpush3.bf16.xpose.msra.mxu0 %v1212_v18  ;;  %1187 = vmatpush3.bf16.xpose.msra.mxu1 %v1212_v18 }
  0x32   :  { %1154 = vmatprep.subr.bf16.mxu0 %v1213_v23  ;;  %1180 = vmatprep.subr.bf16.mxu1 %v1213_v23 }
  0x39   :  { %1155 = vmatpush3.bf16.xpose.msra.mxu0 %v1213_v23  ;;  %1188 = vmatpush3.bf16.xpose.msra.mxu1 %v1213_v23 }
  0x3a   :  { %1156 = vmatprep.subr.bf16.mxu0 %v1214_v26  ;;  %1181 = vmatprep.subr.bf16.mxu1 %v1214_v26 }
  0x41   :  { %1157 = vmatpush3.bf16.xpose.msra.mxu0 %v1214_v26  ;;  %1189 = vmatpush3.bf16.xpose.msra.mxu1 %v1214_v26 }
  0x48   :  { %1159 = vmatmul.mubr.bf16.vlgmr.msra.gmra.mxu0 %v1217_v27  ;;  %1167 = vmatmul.mubr.bf16.vlgmr.msra.gmra.mxu1 %v1218_v28 }
  0x49   :  { %1162 = vmatprep.mubr.bf16.mxu0 %v1219_v29  ;;  %1170 = vmatprep.mubr.bf16.mxu1 %v1220_v30 }
  0x50   :  { %1163 = vmatmul.mubr.bf16.gmra.mxu0 %v1221_v31  ;;  %1171 = vmatmul.mubr.bf16.gmra.mxu1 %v1222_v32 }
  0x86   :  { %v1413_v33 = vpop.permute.xlu1 %669 }
  0x87   :  { %vm2280_vm0 = vcmp.ne.s32.totalorder %v1413_v33, %v1420_v35 }
  0x88   :  { %v1415_v34 = vpop.permute.xlu0 %663 }
  0x89   :  { %vm2282_vm1 = vcmp.ne.s32.totalorder %v1415_v34, %v1420_v35 }
  0x8a   :  { %v1426_v36 = vpop.permute.xlu1 %672 }
  0x8b   :  { %vm2279_vm2 = vcmp.ne.s32.totalorder %v1426_v36, %v1420_v35 }
  0x8e   :  { %v1428_v37 = vpop.permute.xlu0 %666  ;;  %v1434_v38 = vpop.permute.xlu1 %678 }
  0x8f   :  { %vm2281_vm3 = vcmp.ne.s32.totalorder %v1428_v37, %v1420_v35 }
  0x92   :  { %v1436_v39 = vpop.permute.xlu0 %675  ;;  %v1442_v40 = vpop.permute.xlu1 %684 }
  0x96   :  { %v1444_v41 = vpop.permute.xlu0 %681  ;;  %v1446_v42 = vpop.permute.xlu1 %690 }
  0x9a   :  { %v1448_v43 = vpop.permute.xlu0 %687  ;;  %v1450_v44 = vpop.permute.xlu1 %696 }
  0x9e   :  { %v1452_v45 = vpop.permute.xlu0 %693  ;;  %v1454_v46 = vpop.permute.xlu1 %702 }
  0x9f   :  { %2288 = vst [vmem:[#allocation11_spill] sm:$0xff] %v1454_v46 }
  0xa2   :  { %v1456_v47 = vpop.permute.xlu0 %699  ;;  %v1462_v48 = vpop.permute.xlu1 %708 }
  0xa3   :  { %2289 = vst [vmem:[#allocation12_spill] sm:$0xff] %v1462_v48 }
  0xa6   :  { %v1464_v49 = vpop.permute.xlu0 %705 }
  0xa7   :  { %2290 = vst [vmem:[#allocation13_spill] sm:$0xff] %v1464_v49 }
 0x108   :  { %v1160_v50 = vpop.f32.mrf.mxu0  ;;  %v1168_v51 = vpop.f32.mrf.mxu1 }
 0x109   :  { %v1495_v52 = vadd.f32 -1.0, %v1160_v50  ;;  %v1497_v53 = vadd.f32 -1.0, %v1168_v51 }
 0x10a   :  { %v278_v54 = vpop.f32.mrf.mxu0  ;;  %v310_v55 = vpop.f32.mrf.mxu1 }
 0x10b   :  { %v407_v56 = vand.u32 2147483647, %v1495_v52  ;;  %v415_v57 = vand.u32 2147483647, %v1497_v53  ;;  %v1501_v58 = vadd.f32 -1.0, %v278_v54  ;;  %v1503_v59 = vadd.f32 -1.0, %v310_v55 }
 0x10c   :  { %v1161_v60 = vpop.f32.mrf.mxu0  ;;  %v1169_v61 = vpop.f32.mrf.mxu1  ;;  %vm375_vm12 = vcmp.ne.f32.partialorder %v1495_v52, %v1495_v52  ;;  %vm383_vm10 = vcmp.ne.f32.partialorder %v1497_v53, %v1497_v53 }
 0x10d   :  { %v423_v62 = vsub.f32 0.0, %v407_v56  ;;  %v1505_v63 = vadd.f32 -1.0, %v1161_v60  ;;  %v431_v0 = vsub.f32 0.0, %v415_v57  ;;  %v405_v1 = vand.u32 2147483647, %v1501_v58 }
 0x10e   :  { %v1508_v2 = vadd.f32 -1.0, %v1169_v61  ;;  %v281_v3 = vpop.f32.mrf.mxu0  ;;  %v313_v4 = vpop.f32.mrf.mxu1  ;;  %v413_v6 = vand.u32 2147483647, %v1503_v59  ;;  %vm373_vm8 = vcmp.ne.f32.partialorder %v1501_v58, %v1501_v58  ;;  %vm381_vm6 = vcmp.ne.f32.partialorder %v1503_v59, %v1503_v59 }
 0x10f   :  { %v441_v5 = vmul.f32 1.442695, %v423_v62  ;;  %v457_v7 = vmul.f32 1.442695, %v431_v0  ;;  %v421_v8 = vsub.f32 0.0, %v405_v1  ;;  %v1513_v17 = vadd.f32 -1.0, %v281_v3 }
 0x110   :  { %v429_v9 = vsub.f32 0.0, %v413_v6  ;;  %v408_v10 = vand.u32 2147483647, %v1505_v63  ;;  %v1164_v11 = vpop.f32.mrf.mxu0  ;;  %v416_v13 = vand.u32 2147483647, %v1508_v2  ;;  %v1172_v14 = vpop.f32.mrf.mxu1  ;;  %v1515_v18 = vadd.f32 -1.0, %v313_v4 }
 0x111   :  { %1223 = vpow2.f32 %v441_v5  ;;  %v437_v12 = vmul.f32 1.442695, %v421_v8  ;;  %v1517_v20 = vadd.f32 -1.0, %v1164_v11  ;;  %v1519_v22 = vadd.f32 -1.0, %v1172_v14 }
 0x112   :  { %1225 = vpow2.f32 %v457_v7  ;;  %v453_v15 = vmul.f32 1.442695, %v429_v9  ;;  %v424_v16 = vsub.f32 0.0, %v408_v10  ;;  %v432_v19 = vsub.f32 0.0, %v416_v13  ;;  %v294_v26 = vpop.f32.mrf.mxu0  ;;  %v326_v57 = vpop.f32.mrf.mxu1 }
 0x113   :  { %1227 = vpow2.f32 %v437_v12  ;;  %v406_v24 = vand.u32 2147483647, %v1513_v17  ;;  %v414_v25 = vand.u32 2147483647, %v1515_v18  ;;  %v411_v28 = vand.u32 2147483647, %v1517_v20 }
 0x114   :  { %1229 = vpow2.f32 %v453_v15  ;;  %v443_v21 = vmul.f32 1.442695, %v424_v16  ;;  %v459_v23 = vmul.f32 1.442695, %v432_v19  ;;  %v419_v30 = vand.u32 2147483647, %v1519_v22 }
 0x115   :  { %v422_v27 = vsub.f32 0.0, %v406_v24  ;;  %v430_v29 = vsub.f32 0.0, %v414_v25  ;;  %v427_v32 = vsub.f32 0.0, %v411_v28  ;;  %v1525_v50 = vadd.f32 -1.0, %v294_v26  ;;  %v1165_v25 = vpop.f32.mrf.mxu0 }
 0x116   :  { %1231 = vpow2.f32 %v443_v21  ;;  %v435_v54 = vsub.f32 0.0, %v419_v30  ;;  %v1533_v8 = vadd.f32 -1.0, %v326_v57  ;;  %v1543_v57 = vadd.f32 -1.0, %v1165_v25 }
 0x117   :  { %1233 = vpow2.f32 %v459_v23  ;;  %v439_v31 = vmul.f32 1.442695, %v422_v27  ;;  %v455_v51 = vmul.f32 1.442695, %v430_v29  ;;  %v449_v55 = vmul.f32 1.442695, %v427_v32 }
 0x118   :  { %v465_v56 = vmul.f32 1.442695, %v435_v54  ;;  %v409_v62 = vand.u32 2147483647, %v1525_v50  ;;  %v417_v29 = vand.u32 2147483647, %v1533_v8  ;;  %vm376_vm4 = vcmp.ne.f32.partialorder %v1505_v63, %v1505_v63 }
 0x119   :  { %1235 = vpow2.f32 %v439_v31 }
 0x11a   :  { %1237 = vpow2.f32 %v455_v51  ;;  %v425_v16 = vsub.f32 0.0, %v409_v62  ;;  %v433_v12 = vsub.f32 0.0, %v417_v29  ;;  %v2309_v29 = vmax.f32 %v1503_v59, 0.0 }
 0x11b   :  { %1239 = vpow2.f32 %v449_v55 }
 0x11c   :  { %1241 = vpow2.f32 %v465_v56  ;;  %v445_v56 = vmul.f32 1.442695, %v425_v16  ;;  %v461_v6 = vmul.f32 1.442695, %v433_v12 }
 0x11e   :  { %v1224_v60 = vpop.eup %1223 }
 0x11f   :  { %v1226_v0 = vpop.eup %1225  ;;  %v487_v1 = vadd.f32 1.0, %v1224_v60  ;;  %v490_v14 = vmul.f32 -0.5, %v1224_v60  ;;  %v493_v27 = vand.u32 2147483647, %v1224_v60 }
 0x120   :  { %v559_v5 = vadd.f32 1.0, %v1226_v0  ;;  %v1228_v9 = vpop.eup %1227  ;;  %v562_v19 = vmul.f32 -0.5, %v1226_v0  ;;  %v565_v31 = vand.u32 2147483647, %v1226_v0 }
 0x121   :  { %1243 = vlog2.f32 %v487_v1  ;;  %v1230_v13 = vpop.eup %1229  ;;  %v469_v15 = vadd.f32 1.0, %v1228_v9  ;;  %v472_v28 = vmul.f32 -0.5, %v1228_v9  ;;  %v491_v54 = vadd.f32 1.0, %v490_v14 }
 0x122   :  { %1245 = vlog2.f32 %v559_v5  ;;  %v541_v21 = vadd.f32 1.0, %v1230_v13  ;;  %v544_v32 = vmul.f32 -0.5, %v1230_v13  ;;  %v563_v62 = vadd.f32 1.0, %v562_v19 }
 0x123   :  { %v1232_v26 = vpop.eup %1231  ;;  %1247 = vlog2.f32 %v469_v15  ;;  %v475_v1 = vand.u32 2147483647, %v1228_v9  ;;  %vm1546_vm14 = vcmp.lt.f32.partialorder %v493_v27, 0.0004427343  ;;  %v473_v24 = vadd.f32 1.0, %v472_v28 }
 0x124   :  { %v1541_v30 = vpop.eup %1233  ;;  %1249 = vlog2.f32 %v541_v21  ;;  %v496_v51 = vadd.f32 1.0, %v1232_v26  ;;  %v499_v55 = vmul.f32 -0.5, %v1232_v26  ;;  %v547_v23 = vand.u32 2147483647, %v1230_v13 }
 0x125   :  { %v568_v5 = vadd.f32 1.0, %v1541_v30  ;;  %vm1550_vm15 = vcmp.lt.f32.partialorder %v565_v31, 0.0004427343  ;;  %v545_v14 = vadd.f32 1.0, %v544_v32  ;;  %v571_v16 = vmul.f32 -0.5, %v1541_v30 }
 0x126   :  { %1251 = vlog2.f32 %v496_v51  ;;  %v1236_v21 = vpop.eup %1235  ;;  %v492_v25 = vmul.f32 %v1224_v60, %v491_v54  ;;  %v500_v51 = vadd.f32 1.0, %v499_v55  ;;  %v502_v27 = vand.u32 2147483647, %v1232_v26 }
 0x127   :  { %1253 = vlog2.f32 %v568_v5  ;;  %v1555_v19 = vpop.eup %1237  ;;  %v478_v10 = vadd.f32 1.0, %v1236_v21  ;;  %v564_v28 = vmul.f32 %v1226_v0, %v563_v62  ;;  %vm1561_vm13 = vcmp.lt.f32.partialorder %v475_v1, 0.0004427343 }
 0x128   :  { %v1557_v7 = vpop.eup %1239  ;;  %v481_v31 = vmul.f32 -0.5, %v1236_v21  ;;  %v550_v32 = vadd.f32 1.0, %v1555_v19  ;;  %v474_v60 = vmul.f32 %v1228_v9, %v473_v24  ;;  %vm1570_vm11 = vcmp.lt.f32.partialorder %v547_v23, 0.0004427343 }
 0x129   :  { %v1566_v5 = vpop.eup %1241  ;;  %v574_v55 = vand.u32 2147483647, %v1541_v30  ;;  %1255 = vlog2.f32 %v478_v10  ;;  %v523_v0 = vadd.f32 1.0, %v1557_v7  ;;  %v546_v62 = vmul.f32 %v1230_v13, %v545_v14 }
 0x12a   :  { %v572_v1 = vadd.f32 1.0, %v571_v16  ;;  %1257 = vlog2.f32 %v550_v32  ;;  %v501_v3 = vmul.f32 %v1232_v26, %v500_v51  ;;  %vm1578_vm9 = vcmp.lt.f32.partialorder %v502_v27, 0.0004427343 }
 0x12b   :  { %v553_v23 = vmul.f32 -0.5, %v1555_v19  ;;  %1259 = vlog2.f32 %v523_v0  ;;  %v412_v10 = vand.u32 2147483647, %v1543_v57  ;;  %v482_v12 = vadd.f32 1.0, %v481_v31 }
 0x12c   :  { %v484_v13 = vand.u32 2147483647, %v1236_v21  ;;  %v595_v14 = vadd.f32 1.0, %v1566_v5  ;;  %vm1587_vm7 = vcmp.lt.f32.partialorder %v574_v55, 0.0004427343  ;;  %v526_v51 = vmul.f32 -0.5, %v1557_v7 }
 0x12d   :  { %1261 = vpow2.f32 %v445_v56  ;;  %v556_v31 = vand.u32 2147483647, %v1555_v19  ;;  %v2304_v55 = vmax.f32 %v1495_v52, 0.0  ;;  %v554_v49 = vadd.f32 1.0, %v553_v23 }
 0x12e   :  { %v1244_v4 = vpop.eup %1243  ;;  %1263 = vlog2.f32 %v595_v14  ;;  %v2305_v15 = vmax.f32 %v1497_v53, 0.0  ;;  %vm1606_vm5 = vcmp.lt.f32.partialorder %v484_v13, 0.0004427343  ;;  %v1173_v14 = vpop.f32.mrf.mxu1  ;;  %v428_v23 = vsub.f32 0.0, %v412_v10 }
 0x12f   :  { %v1246_v24 = vpop.eup %1245  ;;  %v489_v61 = vmul.f32 0.6931472, %v1244_v4  ;;  %v573_v4 = vmul.f32 %v1541_v30, %v572_v1  ;;  %v483_v30 = vmul.f32 %v1236_v21, %v482_v12  ;;  %1265 = vpow2.f32 %v461_v6 }
 0x130   :  { %v561_v16 = vmul.f32 0.6931472, %v1246_v24  ;;  %v1248_v27 = vpop.eup %1247  ;;  %v2308_v6 = vmax.f32 %v1501_v58, 0.0  ;;  %v598_v10 = vmul.f32 -0.5, %v1566_v5 }
 0x131   :  { %v495_v32 = vsel %vm1546_vm14, %v492_v25, %v489_v61  ;;  %v1250_v0 = vpop.eup %1249  ;;  %v471_v56 = vmul.f32 0.6931472, %v1248_v27  ;;  %vm384_vm14 = vcmp.ne.f32.partialorder %v1508_v2, %v1508_v2 }
 0x132   :  { %v615_v24 = vadd.f32 %v495_v32, %v2304_v55  ;;  %v567_v48 = vsel %vm1550_vm15, %v564_v28, %v561_v16  ;;  %v543_v25 = vmul.f32 0.6931472, %v1250_v0  ;;  %v527_v28 = vadd.f32 1.0, %v526_v51  ;;  %v297_v16 = vpop.f32.mrf.mxu0 }
 0x133   :  { %v623_v61 = vadd.f32 %v567_v48, %v2305_v15  ;;  %v1252_v32 = vpop.eup %1251  ;;  %v477_v48 = vsel %vm1561_vm13, %v474_v60, %v471_v56  ;;  %v451_v51 = vmul.f32 1.442695, %v428_v23  ;;  %v1633_v0 = vadd.f32 -1.0, %v1173_v14 }
 0x134   :  { %v1614_v11 = vsel %vm375_vm12, %v1495_v52, %v615_v24  ;;  %v613_v12 = vadd.f32 %v477_v48, %v2308_v6  ;;  %v549_v13 = vsel %vm1570_vm11, %v546_v62, %v543_v25  ;;  %v498_v52 = vmul.f32 0.6931472, %v1252_v32  ;;  %v1254_v27 = vpop.eup %1253 }
 0x135   :  { %v1622_v21 = vsel %vm383_vm10, %v1497_v53, %v623_v61  ;;  %v621_v60 = vadd.f32 %v549_v13, %v2309_v29  ;;  %vm374_vm12 = vcmp.ne.f32.partialorder %v1513_v17, %v1513_v17  ;;  %v570_v62 = vmul.f32 0.6931472, %v1254_v27  ;;  %v329_v27 = vpop.f32.mrf.mxu1 }
 0x136   :  { %v1639_v53 = vsel %vm373_vm8, %v1501_v58, %v613_v12  ;;  %v504_v54 = vsel %vm1578_vm9, %v501_v3, %v498_v52  ;;  %vm382_vm10 = vcmp.ne.f32.partialorder %v1515_v18, %v1515_v18  ;;  %v1645_v55 = vadd.f32 -1.0, %v297_v16  ;;  %v1256_v3 = vpop.eup %1255 }
 0x137   :  { %2310 = vst [vmem:[#allocation14_spill] sm:$0xff] %v1639_v53  ;;  %v1651_v24 = vsel %vm381_vm6, %v1503_v59, %v621_v60  ;;  %v2311_v56 = vmax.f32 %v1505_v63, 0.0  ;;  %vm1655_vm8 = vcmp.lt.f32.partialorder %v556_v31, 0.0004427343  ;;  %vm379_vm9 = vcmp.ne.f32.partialorder %v1517_v20, %v1517_v20  ;;  %v1258_v14 = vpop.eup %1257 }
 0x138   :  { %1267 = vpow2.f32 %v451_v51  ;;  %v576_v9 = vsel %vm1587_vm7, %v573_v4, %v570_v62  ;;  %v555_v61 = vmul.f32 %v1555_v19, %v554_v49  ;;  %v529_v59 = vand.u32 2147483647, %v1557_v7  ;;  %v1260_v26 = vpop.eup %1259 }
 0x139   :  { %v616_v15 = vadd.f32 %v504_v54, %v2311_v56  ;;  %v420_v25 = vand.u32 2147483647, %v1633_v0  ;;  %v2315_v32 = vmax.f32 %v1508_v2, 0.0  ;;  %v480_v23 = vmul.f32 0.6931472, %v1256_v3 }
 0x13a   :  { %v599_v16 = vadd.f32 1.0, %v598_v10  ;;  %v552_v4 = vmul.f32 0.6931472, %v1258_v14  ;;  %v528_v49 = vmul.f32 %v1557_v7, %v527_v28  ;;  %v601_v19 = vand.u32 2147483647, %v1566_v5  ;;  %v1262_v29 = vpop.eup %1261 }
 0x13b   :  { %v1670_v31 = vsel %vm376_vm4, %v1505_v63, %v616_v15  ;;  %v624_v48 = vadd.f32 %v576_v9, %v2315_v32  ;;  %v410_v6 = vand.u32 2147483647, %v1645_v55  ;;  %v486_v63 = vsel %vm1606_vm5, %v483_v30, %v480_v23  ;;  %v1264_v51 = vpop.eup %1263 }
 0x13c   :  { %2314 = vst [vmem:[#allocation15_spill] sm:$0xff] %v1670_v31  ;;  %v525_v13 = vmul.f32 0.6931472, %v1260_v26  ;;  %v436_v52 = vsub.f32 0.0, %v420_v25  ;;  %v2316_v60 = vmax.f32 %v1513_v17, 0.0  ;;  %v558_v28 = vsel %vm1655_vm8, %v555_v61, %v552_v4  ;;  %v1266_v61 = vpop.eup %1265 }
 0x13d   :  { %v1681_v12 = vsel %vm384_vm14, %v1508_v2, %v624_v48  ;;  %vm530_vm4 = vcmp.lt.f32.partialorder %v529_v59, 0.0004427343  ;;  %v426_v10 = vsub.f32 0.0, %v410_v6  ;;  %v2317_v54 = vmax.f32 %v1515_v18, 0.0 }
 0x13e   :  { %v614_v7 = vadd.f32 %v486_v63, %v2316_v60  ;;  %v531_v62 = vsel %vm530_vm4, %v528_v49, %v525_v13  ;;  %v600_v1 = vmul.f32 %v1566_v5, %v599_v16  ;;  %v505_v30 = vadd.f32 1.0, %v1262_v29 }
 0x13f   :  { %v622_v2 = vadd.f32 %v558_v28, %v2317_v54  ;;  %v2319_v15 = vmax.f32 %v1517_v20, 0.0  ;;  %v597_v3 = vmul.f32 0.6931472, %v1264_v51  ;;  %v1700_v9 = vadd.f32 -1.0, %v329_v27 }
 0x140   :  { %v1696_v56 = vsel %vm374_vm12, %v1513_v17, %v614_v7  ;;  %vm602_vm5 = vcmp.lt.f32.partialorder %v601_v19, 0.0004427343  ;;  %1269 = vlog2.f32 %v505_v30  ;;  %v467_v5 = vmul.f32 1.442695, %v436_v52 }
 0x141   :  { %2318 = vst [vmem:[#allocation16_spill] sm:$0xff] %v1696_v56  ;;  %v619_v58 = vadd.f32 %v531_v62, %v2319_v15  ;;  %v1706_v59 = vsel %vm382_vm10, %v1515_v18, %v622_v2  ;;  %v603_v25 = vsel %vm602_vm5, %v600_v1, %v597_v3  ;;  %v577_v14 = vadd.f32 1.0, %v1266_v61 }
 0x142   :  { %v447_v32 = vmul.f32 1.442695, %v426_v10  ;;  %v2320_v48 = vmax.f32 %v1519_v22, 0.0  ;;  %vm387_vm6 = vcmp.ne.f32.partialorder %v1519_v22, %v1519_v22  ;;  %v418_v18 = vand.u32 2147483647, %v1700_v9 }
 0x143   :  { %v1712_v17 = vsel %vm379_vm9, %v1517_v20, %v619_v58  ;;  %1271 = vlog2.f32 %v577_v14  ;;  %v508_v4 = vmul.f32 -0.5, %v1262_v29  ;;  %v580_v6 = vmul.f32 -0.5, %v1266_v61 }
 0x144   :  { %v627_v23 = vadd.f32 %v603_v25, %v2320_v48  ;;  %1273 = vpow2.f32 %v467_v5  ;;  %v434_v20 = vsub.f32 0.0, %v418_v18  ;;  %v511_v13 = vand.u32 2147483647, %v1262_v29 }
 0x145   :  { %v1268_v26 = vpop.eup %1267  ;;  %1275 = vpow2.f32 %v447_v32  ;;  %v509_v63 = vadd.f32 1.0, %v508_v4  ;;  %v581_v27 = vadd.f32 1.0, %v580_v6  ;;  %v583_v28 = vand.u32 2147483647, %v1266_v61 }
 0x146   :  { %v1720_v16 = vsel %vm387_vm6, %v1519_v22, %v627_v23  ;;  %v532_v49 = vadd.f32 1.0, %v1268_v26  ;;  %v463_v19 = vmul.f32 1.442695, %v434_v20  ;;  %v535_v10 = vmul.f32 -0.5, %v1268_v26 }
 0x147   :  { %v510_v7 = vmul.f32 %v1262_v29, %v509_v63  ;;  %v361_v22 = vmax.f32 %v1525_v50, 0.0  ;;  %vm512_vm7 = vcmp.lt.f32.partialorder %v511_v13, 0.0004427343  ;;  %vm377_vm11 = vcmp.ne.f32.partialorder %v1525_v50, %v1525_v50 }
 0x148   :  { %1277 = vlog2.f32 %v532_v49  ;;  %v582_v30 = vmul.f32 %v1266_v61, %v581_v27  ;;  %v369_v58 = vmax.f32 %v1533_v8, 0.0  ;;  %vm584_vm13 = vcmp.lt.f32.partialorder %v583_v28, 0.0004427343 }
 0x149   :  { %1279 = vpow2.f32 %v463_v19  ;;  %v536_v3 = vadd.f32 1.0, %v535_v10  ;;  %v538_v14 = vand.u32 2147483647, %v1268_v26  ;;  %vm385_vm15 = vcmp.ne.f32.partialorder %v1533_v8, %v1533_v8 }
 0x14a   :  { %v364_v49 = vmax.f32 %v1543_v57, 0.0  ;;  %vm380_vm12 = vcmp.ne.f32.partialorder %v1543_v57, %v1543_v57  ;;  %vm388_vm9 = vcmp.ne.f32.partialorder %v1633_v0, %v1633_v0  ;;  %vm378_vm4 = vcmp.ne.f32.partialorder %v1645_v55, %v1645_v55 }
 0x14b   :  { %v537_v4 = vmul.f32 %v1268_v26, %v536_v3  ;;  %vm539_vm14 = vcmp.lt.f32.partialorder %v538_v14, 0.0004427343  ;;  %vm386_vm6 = vcmp.ne.f32.partialorder %v1700_v9, %v1700_v9 }
 0x14d   :  { %v1270_v52 = vpop.eup %1269 }
 0x14e   :  { %v507_v60 = vmul.f32 0.6931472, %v1270_v52 }
 0x150   :  { %v1272_v51 = vpop.eup %1271  ;;  %v513_v54 = vsel %vm512_vm7, %v510_v7, %v507_v60 }
 0x151   :  { %v1274_v2 = vpop.eup %1273  ;;  %v617_v62 = vadd.f32 %v513_v54, %v361_v22  ;;  %v579_v1 = vmul.f32 0.6931472, %v1272_v51  ;;  %v372_v22 = vmax.f32 %v1633_v0, 0.0 }
 0x152   :  { %v1276_v15 = vpop.eup %1275  ;;  %v604_v29 = vadd.f32 1.0, %v1274_v2  ;;  %v607_v63 = vmul.f32 -0.5, %v1274_v2 }
 0x153   :  { %v1727_v5 = vsel %vm377_vm11, %v1525_v50, %v617_v62  ;;  %v585_v25 = vsel %vm584_vm13, %v582_v30, %v579_v1  ;;  %v514_v32 = vadd.f32 1.0, %v1276_v15  ;;  %v517_v52 = vmul.f32 -0.5, %v1276_v15 }
 0x154   :  { %v625_v48 = vadd.f32 %v585_v25, %v369_v58  ;;  %1281 = vlog2.f32 %v604_v29  ;;  %v608_v27 = vadd.f32 1.0, %v607_v63  ;;  %v520_v26 = vand.u32 2147483647, %v1276_v15 }
 0x155   :  { %v1278_v23 = vpop.eup %1277  ;;  %1283 = vlog2.f32 %v514_v32  ;;  %v518_v60 = vadd.f32 1.0, %v517_v52  ;;  %v774_v63 = vstv (%p1491_p5), %s1125_s14 }
 0x156   :  { %v1280_v61 = vpop.eup %1279  ;;  %v1732_v18 = vsel %vm385_vm15, %v1533_v8, %v625_v48  ;;  %v534_v20 = vmul.f32 0.6931472, %v1278_v23  ;;  %v610_v8 = vand.u32 2147483647, %v1274_v2  ;;  %v609_v54 = vmul.f32 %v1274_v2, %v608_v27 }
 0x157   :  { %v586_v50 = vadd.f32 1.0, %v1280_v61  ;;  %v589_v7 = vmul.f32 -0.5, %v1280_v61  ;;  %v519_v1 = vmul.f32 %v1276_v15, %v518_v60  ;;  %vm521_vm8 = vcmp.lt.f32.partialorder %v520_v26, 0.0004427343 }
 0x158   :  { %v540_v19 = vsel %vm539_vm14, %v537_v4, %v534_v20  ;;  %vm611_vm10 = vcmp.lt.f32.partialorder %v610_v8, 0.0004427343  ;;  %v592_v3 = vand.u32 2147483647, %v1280_v61  ;;  %v370_v20 = vmax.f32 %v1700_v9, 0.0 }
 0x159   :  { %v620_v6 = vadd.f32 %v540_v19, %v364_v49  ;;  %1285 = vlog2.f32 %v586_v50  ;;  %v590_v30 = vadd.f32 1.0, %v589_v7 }
 0x15a   :  { %vm593_vm5 = vcmp.lt.f32.partialorder %v592_v3, 0.0004427343 }
 0x15b   :  { %v1738_v13 = vsel %vm380_vm12, %v1543_v57, %v620_v6  ;;  %v362_v57 = vmax.f32 %v1645_v55, 0.0  ;;  %v591_v15 = vmul.f32 %v1280_v61, %v590_v30  ;;  %v754_v6 = vstv (%p1491_p5), %s1124_s11 }
 0x161   :  { %v1282_v28 = vpop.eup %1281 }
 0x162   :  { %v1284_v10 = vpop.eup %1283  ;;  %v606_v51 = vmul.f32 0.6931472, %v1282_v28 }
 0x163   :  { %v516_v62 = vmul.f32 0.6931472, %v1284_v10 }
 0x164   :  { %v612_v58 = vsel %vm611_vm10, %v609_v54, %v606_v51 }
 0x165   :  { %v628_v29 = vadd.f32 %v612_v58, %v372_v22  ;;  %v522_v25 = vsel %vm521_vm8, %v519_v1, %v516_v62 }
 0x166   :  { %v1286_v14 = vpop.eup %1285  ;;  %v618_v32 = vadd.f32 %v522_v25, %v362_v57 }
 0x167   :  { %v1745_v48 = vsel %vm388_vm9, %v1633_v0, %v628_v29  ;;  %v588_v2 = vmul.f32 0.6931472, %v1286_v14  ;;  %v737_v0 = vlaneseq (%p1491_p5) }
 0x168   :  { %v1750_v23 = vsel %vm378_vm4, %v1645_v55, %v618_v32  ;;  %735 = sbr.rel (!%p1491_p5) target bundleno = 623 (0x26f), region = 25 }
 0x169   :  { %v594_v4 = vsel %vm593_vm5, %v591_v15, %v588_v2  ;;  %v738_v19 = vshrl.u32 (%p1491_p5), %v737_v0, 7  ;;  %v773_v55 = vand.u32 (%p1491_p5), 127, %v737_v0 }
 0x16a   :  { %v626_v49 = vadd.f32 %v594_v4, %v370_v20  ;;  %v2325_v4 = vmov (%p1491_p5), 0 }
 0x16b   :  { %v739_v61 = vadd.s32 (%p1491_p5), 8, %v738_v19  ;;  %v740_v52 = vadd.s32 (%p1491_p5), 16, %v738_v19  ;;  %v742_v27 = vadd.s32 (%p1491_p5), 32, %v738_v19  ;;  %v755_v8 = vadd.s32 (%p1491_p5), %v754_v6, %v738_v19 }
 0x16c   :  { %v1756_v50 = vsel %vm386_vm6, %v1700_v9, %v626_v49  ;;  %v741_v9 = vadd.s32 (%p1491_p5), 24, %v738_v19  ;;  %v1766_v60 = vadd.s32 (%p1491_p5), %v774_v63, %v773_v55  ;;  %v743_v7 = vadd.s32 (%p1491_p5), 40, %v738_v19 }
 0x16d   :  { %v756_v26 = vadd.s32 %v754_v6, %v739_v61  ;;  %v744_v28 = vadd.s32 48, %v738_v19  ;;  %v757_v10 = vadd.s32 %v754_v6, %v740_v52  ;;  %v745_v22 = vadd.s32 56, %v738_v19 }
 0x16e   :  { %v1768_v51 = vadd.s32 %v754_v6, %v741_v9  ;;  %v746_v54 = vadd.s32 64, %v738_v19  ;;  %v1770_v62 = vadd.s32 %v754_v6, %v742_v27  ;;  %vm776_vm7 = vcmp.gt.s32.totalorder %v755_v8, %v1766_v60 }
 0x16f   :  { %v747_v1 = vadd.s32 72, %v738_v19  ;;  %v1773_v30 = vadd.s32 %v754_v6, %v743_v7  ;;  %vm777_vm11 = vcmp.gt.s32.totalorder %v756_v26, %v1766_v60  ;;  %v748_v58 = vadd.s32 80, %v738_v19  ;;  %vm1786_vm14 = vmand %vm2282_vm1, %vm776_vm7 }
 0x170   :  { %v1776_v57 = vadd.s32 %v754_v6, %v744_v28  ;;  %vm778_vm13 = vcmp.gt.s32.totalorder %v757_v10, %v1766_v60  ;;  %v749_v3 = vadd.s32 88, %v738_v19  ;;  %v1779_v29 = vadd.s32 %v754_v6, %v745_v22  ;;  %vm1797_vm10 = vmand %vm2281_vm3, %vm777_vm11 }
 0x171   :  { %vm779_vm15 = vcmp.gt.s32.totalorder %v1768_v51, %v1766_v60  ;;  %v750_v14 = vadd.s32 96, %v738_v19  ;;  %v1790_v32 = vadd.s32 %v754_v6, %v746_v54  ;;  %vm780_vm12 = vcmp.gt.s32.totalorder %v1770_v62, %v1766_v60  ;;  %vm1808_vm9 = vmand %vm2280_vm0, %vm778_vm13 }
 0x172   :  { %v751_v15 = vadd.s32 104, %v738_v19  ;;  %v1801_v20 = vadd.s32 %v754_v6, %v747_v1  ;;  %vm781_vm8 = vcmp.gt.s32.totalorder %v1773_v30, %v1766_v60  ;;  %v2326_v4 = vsel %vm1808_vm9, 4294967295, %v2325_v4  ;;  %vm1819_vm5 = vmand %vm2279_vm2, %vm779_vm15 }
 0x173   :  { %v752_v49 = vadd.s32 112, %v738_v19  ;;  %v1812_v0 = vadd.s32 %v754_v6, %v748_v58  ;;  %vm782_vm4 = vcmp.gt.s32.totalorder %v1776_v57, %v1766_v60  ;;  %v2327_v55 = vmov 0 }
 0x174   :  { %v2328_v55 = vsel %vm1819_vm5, 4294967295, %v2327_v55  ;;  %v753_v61 = vadd.s32 120, %v738_v19  ;;  %v1823_v63 = vadd.s32 %v754_v6, %v749_v3  ;;  %vm783_vm6 = vcmp.gt.s32.totalorder %v1779_v29, %v1766_v60 }
 0x175   :  { %vm2329_vm7 = vcmp.ne.s32.totalorder %v1436_v39, %v1420_v35  ;;  %v2330_v52 = vmov 0  ;;  %v1834_v9 = vadd.s32 %v754_v6, %v750_v14  ;;  %vm784_vm13 = vcmp.gt.s32.totalorder %v1790_v32, %v1766_v60 }
 0x176   :  { %vm1830_vm11 = vmand %vm2329_vm7, %vm780_vm12  ;;  %vm2332_vm15 = vcmp.ne.s32.totalorder %v1434_v38, %v1420_v35  ;;  %v2333_v19 = vmov 0  ;;  %v1845_v27 = vadd.s32 %v754_v6, %v751_v15  ;;  %vm785_vm12 = vcmp.gt.s32.totalorder %v1801_v20, %v1766_v60  ;;  %v2366_v15 = vld [vmem:[#allocation13_spill] sm:$0xff] }
 0x177   :  { %v2331_v52 = vsel %vm1830_vm11, 4294967295, %v2330_v52  ;;  %vm1841_vm2 = vmand %vm2332_vm15, %vm781_vm8  ;;  %vm2335_vm7 = vcmp.ne.s32.totalorder %v1444_v41, %v1420_v35  ;;  %v2336_v7 = vmov 0  ;;  %v1856_v28 = vadd.s32 %v754_v6, %v752_v49 }
 0x178   :  { %v2334_v19 = vsel %vm1841_vm2, 4294967295, %v2333_v19  ;;  %vm1852_vm0 = vmand %vm2335_vm7, %vm782_vm4  ;;  %vm786_vm8 = vcmp.gt.s32.totalorder %v1812_v0, %v1766_v60  ;;  %vm2338_vm15 = vcmp.ne.s32.totalorder %v1442_v40, %v1420_v35  ;;  %v2339_v22 = vmov 0 }
 0x179   :  { %v2337_v7 = vsel %vm1852_vm0, 4294967295, %v2336_v7  ;;  %vm1863_vm3 = vmand %vm2338_vm15, %vm783_vm6  ;;  %v1867_v54 = vadd.s32 %v754_v6, %v753_v61  ;;  %vm787_vm4 = vcmp.gt.s32.totalorder %v1823_v63, %v1766_v60  ;;  %vm2341_vm7 = vcmp.ne.s32.totalorder %v1448_v43, %v1420_v35 }
 0x17a   :  { %v2340_v22 = vsel %vm1863_vm3, 4294967295, %v2339_v22  ;;  %vm1874_vm1 = vmand %vm2341_vm7, %vm784_vm13  ;;  %v2342_v1 = vmov 0  ;;  %vm808_vm0 = vcmp.lt.s32.totalorder %v755_v8, 8  ;;  %vm788_vm2 = vcmp.gt.s32.totalorder %v1834_v9, %v1766_v60 }
 0x17b   :  { %v2343_v1 = vsel %vm1874_vm1, 4294967295, %v2342_v1  ;;  %vm2344_vm6 = vcmp.ne.s32.totalorder %v1446_v42, %v1420_v35  ;;  %v2345_v6 = vmov 0  ;;  %vm809_vm3 = vcmp.lt.s32.totalorder %v756_v26, 8  ;;  %vm1908_vm9 = vmand %vm1786_vm14, %vm808_vm0 }
 0x17c   :  { %vm1883_vm15 = vmand %vm2344_vm6, %vm785_vm12  ;;  %vm789_vm11 = vcmp.gt.s32.totalorder %v1845_v27, %v1766_v60  ;;  %vm2347_vm13 = vcmp.ne.s32.totalorder %v1452_v45, %v1420_v35  ;;  %v2348_v58 = vmov 0  ;;  %vm810_vm1 = vcmp.lt.s32.totalorder %v757_v10, 8 }
 0x17d   :  { %v2346_v6 = vsel %vm1883_vm15, 4294967295, %v2345_v6  ;;  %vm1892_vm7 = vmand %vm2347_vm13, %vm786_vm8  ;;  %vm790_vm5 = vcmp.gt.s32.totalorder %v1856_v28, %v1766_v60  ;;  %vm2350_vm12 = vcmp.ne.s32.totalorder %v1450_v44, %v1420_v35  ;;  %vm811_vm15 = vcmp.lt.s32.totalorder %v1768_v51, 8 }
 0x17e   :  { %v2349_v58 = vsel %vm1892_vm7, 4294967295, %v2348_v58  ;;  %vm1901_vm6 = vmand %vm2350_vm12, %vm787_vm4  ;;  %vm791_vm8 = vcmp.gt.s32.totalorder %v1867_v54, %v1766_v60  ;;  %vm2355_vm13 = vcmp.ne.s32.totalorder %v1456_v47, %v1420_v35  ;;  %v841_v3 = vsel %vm1908_vm9, %v1639_v53, 0.0 }
 0x17f   :  { %vm1917_vm7 = vmand %vm2355_vm13, %vm788_vm2  ;;  %vm2360_vm0 = vcmp.ne.s32.totalorder %v1454_v46, %v1420_v35  ;;  %vm2363_vm13 = vnez %v2326_v4  ;;  %v2373_v46 = vld [vmem:[#allocation12_spill] sm:$0xff] }
 0x180   :  { %vm1924_vm12 = vmand %vm1797_vm10, %vm809_vm3  ;;  %vm2367_vm3 = vcmp.ne.s32.totalorder %v2366_v15, %v1420_v35 }
 0x181   :  { %vm1934_vm14 = vmand %vm2360_vm0, %vm789_vm11  ;;  %v842_v2 = vsel %vm1924_vm12, %v1696_v56, 0.0  ;;  %vm814_vm11 = vcmp.lt.s32.totalorder %v1776_v57, 8  ;;  %vm2370_vm0 = vnez %v2328_v55  ;;  %v1310_v56 = vmov 0  }
 0x182   :  { %vm1941_vm4 = vmand %vm2363_vm13, %vm810_vm1  ;;  %v885_v15 = vsel %vm1908_vm9, 1, %v1310_v56  ;;  %v857_v53 = vadd.f32 %v842_v2, %v841_v3  ;;  %vm2374_vm1 = vcmp.ne.s32.totalorder %v2373_v46, %v1420_v35  ;;  %v886_v60 = vsel %vm1924_vm12, 1, %v1310_v56 }
 0x183   :  { %vm1951_vm10 = vmand %vm2367_vm3, %vm790_vm5  ;;  %v843_v61 = vsel %vm1941_vm4, %v1614_v11, 0.0  ;;  %vm2377_vm3 = vcmp.lt.s32.totalorder %v1770_v62, 8  ;;  %vm2382_vm13 = vnez %v2334_v19  ;;  %vm2385_vm12 = vnez %v2337_v7 }
 0x184   :  { %vm1958_vm2 = vmand %vm2370_vm0, %vm811_vm15  ;;  %vm2378_vm0 = vnez %v2331_v52  ;;  %v887_v52 = vsel %vm1941_vm4, 1, %v1310_v56  ;;  %v858_v2 = vadd.f32 %v857_v53, %v843_v61  ;;  %vm818_vm4 = vcmp.lt.s32.totalorder %v1812_v0, 8 }
 0x185   :  { %vm1973_vm5 = vmand %vm2374_vm1, %vm791_vm8  ;;  %v844_v46 = vsel %vm1958_vm2, %v1670_v31, 0.0  ;;  %vm817_vm8 = vcmp.lt.s32.totalorder %v1801_v20, 8  ;;  %vm2381_vm1 = vcmp.lt.s32.totalorder %v1773_v30, 8  ;;  %v888_v19 = vsel %vm1958_vm2, 1, %v1310_v56 }
 0x186   :  { %vm1983_vm9 = vmand %vm2378_vm0, %vm2377_vm3  ;;  %v859_v4 = vadd.f32 %v858_v2, %v844_v46 }
 0x187   :  { %vm1997_vm15 = vmand %vm2382_vm13, %vm2381_vm1  ;;  %v889_v3 = vsel %vm1983_vm9, 1, %v1310_v56  ;;  %v845_v30 = vsel %vm1983_vm9, %v1727_v5, 0.0  ;;  %vm2388_vm13 = vcmp.lt.s32.totalorder %v1779_v29, 8  ;;  %vm2392_vm9 = vcmp.lt.s32.totalorder %v1790_v32, 8 }
 0x188   :  { %vm2009_vm3 = vmand %vm2385_vm12, %vm814_vm11  ;;  %v890_v14 = vsel %vm1997_vm15, 1, %v1310_v56  ;;  %v901_v31 = vadd.s32 %v889_v3, %v885_v15  ;;  %vm2389_vm11 = vnez %v2340_v22  ;;  %vm2393_vm1 = vnez %v2343_v1 }
 0x189   :  { %vm2025_vm0 = vmand %vm2389_vm11, %vm2388_vm13  ;;  %v891_v57 = vsel %vm2009_vm3, 1, %v1310_v56  ;;  %v902_v7 = vadd.s32 %v890_v14, %v886_v60  ;;  %v846_v29 = vsel %vm1997_vm15, %v1750_v23, 0.0  ;;  %vm820_vm13 = vcmp.lt.s32.totalorder %v1834_v9, 8 }
 0x18a   :  { %vm2036_vm12 = vmand %vm2393_vm1, %vm2392_vm9  ;;  %v892_v22 = vsel %vm2025_vm0, 1, %v1310_v56  ;;  %v903_v15 = vadd.s32 %v891_v57, %v887_v52  ;;  %vm2396_vm11 = vnez %v2346_v6  ;;  %v860_v46 = vadd.f32 %v859_v4, %v845_v30 }
 0x18b   :  { %vm2050_vm2 = vmand %vm2396_vm11, %vm817_vm8  ;;  %v893_v1 = vsel %vm2036_vm12, 1, %v1310_v56  ;;  %v904_v26 = vadd.s32 %v892_v22, %v888_v19  ;;  %vm2399_vm9 = vnez %v2349_v58  ;;  %v847_v20 = vsel %vm2009_vm3, %v1712_v17, 0.0 }
 0x18c   :  { %vm2061_vm1 = vmand %vm2399_vm9, %vm818_vm4  ;;  %v894_v6 = vsel %vm2050_vm2, 1, %v1310_v56  ;;  %v905_v62 = vadd.s32 %v901_v31, %v893_v1  ;;  %vm822_vm8 = vcmp.lt.s32.totalorder %v1856_v28, 8  ;;  %vm2402_vm11 = vcmp.lt.s32.totalorder %v1823_v63, 8 }
 0x18d   :  { %vm2075_vm15 = vmand %vm1901_vm6, %vm2402_vm11  ;;  %v895_v58 = vsel %vm2061_vm1, 1, %v1310_v56  ;;  %v906_v52 = vadd.s32 %v902_v7, %v894_v6  ;;  %v861_v3 = vadd.f32 %v860_v46, %v846_v29  ;;  %vm823_vm3 = vcmp.lt.s32.totalorder %v1867_v54, 8 }
 0x18e   :  { %vm2086_vm4 = vmand %vm1917_vm7, %vm820_vm13  ;;  %v848_v63 = vsel %vm2025_vm0, %v1738_v13, 0.0  ;;  %v896_v28 = vsel %vm2075_vm15, 1, %v1310_v56  ;;  %v907_v8 = vadd.s32 %v903_v15, %v895_v58  ;;  %vm2407_vm6 = vcmp.lt.s32.totalorder %v1845_v27, 8 }
 0x18f   :  { %vm2099_vm9 = vmand %vm1934_vm14, %vm2407_vm6  ;;  %v897_v54 = vsel %vm2086_vm4, 1, %v1310_v56  ;;  %v908_v10 = vadd.s32 %v904_v26, %v896_v28  ;;  %v862_v2 = vadd.f32 %v861_v3, %v847_v20  ;;  %v849_v27 = vsel %vm2036_vm12, %v1651_v24, 0.0 }
 0x190   :  { %vm2107_vm7 = vmand %vm1951_vm10, %vm822_vm8  ;;  %v898_v25 = vsel %vm2099_vm9, 1, %v1310_v56  ;;  %v909_v30 = vadd.s32 %v905_v62, %v897_v54  ;;  %v850_v57 = vsel %vm2050_vm2, %v1706_v59, 0.0  ;;  %v851_v22 = vsel %vm2061_vm1, %v1622_v21, 0.0 }
 0x191   :  { %vm2118_vm14 = vmand %vm1973_vm5, %vm823_vm3  ;;  %v899_v49 = vsel %vm2107_vm7, 1, %v1310_v56  ;;  %v910_v14 = vadd.s32 %v906_v52, %v898_v25  ;;  %v863_v53 = vadd.f32 %v862_v2, %v848_v63  ;;  %v852_v26 = vsel %vm2075_vm15, %v1681_v12, 0.0 }
 0x192   :  { %v900_v7 = vsel %vm2118_vm14, 1, %v1310_v56  ;;  %v911_v4 = vadd.s32 %v907_v8, %v899_v49  ;;  %v853_v56 = vsel %vm2086_vm4, %v1732_v18, 0.0  ;;  %v854_v60 = vsel %vm2099_vm9, %v1756_v50, 0.0 }
 0x193   :  { %v912_v61 = vadd.s32 %v908_v10, %v900_v7  ;;  %v913_v29 = vadd.s32 %v910_v14, %v909_v30  ;;  %v864_v55 = vadd.f32 %v863_v53, %v849_v27  ;;  %v855_v0 = vsel %vm2107_vm7, %v1720_v16, 0.0 }
 0x194   :  { %v856_v31 = vsel %vm2118_vm14, %v1745_v48, 0.0 }
 0x195   :  { %v914_v15 = vadd.s32 %v912_v61, %v911_v4  ;;  %v865_v1 = vadd.f32 %v864_v55, %v850_v57 }
 0x197   :  { %v915_v46 = vadd.s32 %v914_v15, %v913_v29  ;;  %v866_v32 = vadd.f32 %v865_v1, %v851_v22 }
 0x199   :  { %v917_v20 = vshrl.u32 %v915_v46, 16  ;;  %v916_v6 = vand.u32 65535, %v915_v46  ;;  %v867_v62 = vadd.f32 %v866_v32, %v852_v26 }
 0x19b   :  { %v919_v58 = vcvt.s32.f32 %v917_v20  ;;  %v868_v52 = vadd.f32 %v867_v62, %v853_v56  ;;  %v918_v3 = vcvt.s32.f32 %v916_v6 }
 0x19d   :  { %922 = vadd.xlane.f32.xlu0 %v919_v58  ;;  %v869_v63 = vadd.f32 %v868_v52, %v854_v60 }
 0x19f   :  { %v870_v28 = vadd.f32 %v869_v63, %v855_v0 }
 0x1a1   :  { %920 = vadd.xlane.f32.xlu0 %v918_v3  ;;  %v871_v8 = vadd.f32 %v870_v28, %v856_v31 }
 0x1a3   :  { %872 = vadd.xlane.f32.xlu1 %v871_v8 }
 0x226   :  { %v923_v54 = vpop.xlane.xlu0 %922 }
 0x227   :  { %v925_v9 = vcvt.f32.s32 %v923_v54 }
 0x229   :  { %v926_v10 = vshll.u32 %v925_v9, 16 }
 0x22a   :  { %v921_v2 = vpop.xlane.xlu0 %920 }
 0x22b   :  { %v924_v27 = vcvt.f32.s32 %v921_v2 }
 0x22c   :  { %v873_v25 = vpop.xlane.xlu1 %872 }
 0x22d   :  { %v927_v30 = vadd.s32 %v926_v10, %v924_v27  ;;  %v874_v51 = vrot.slane %v873_v25, 4 }
 0x22f   :  { %v928_v49 = vrot.slane %v927_v30, 4  ;;  %v875_v14 = vadd.f32 %v874_v51, %v873_v25 }
 0x231   :  { %v929_v53 = vadd.s32 %v928_v49, %v927_v30  ;;  %v876_v57 = vrot.slane %v875_v14, 2 }
 0x233   :  { %v877_v7 = vadd.f32 %v876_v57, %v875_v14  ;;  %v930_v4 = vrot.slane %v929_v53, 2 }
 0x235   :  { %v878_v19 = vrot.slane %v877_v7, 1  ;;  %v931_v61 = vadd.s32 %v930_v4, %v929_v53 }
 0x237   :  { %v879_v29 = vadd.f32 %v878_v19, %v877_v7  ;;  %v932_v55 = vrot.slane %v931_v61, 1 }
 0x239   :  { %1190 = vpush %v879_v29  ;;  %v933_v22 = vadd.s32 %v932_v55, %v931_v61 }
 0x23b   :  { %1192 = vpush %v933_v22 }
 0x26a   :  { %s1191_s15 = spop %1190 }
 0x26b   :  { %s881_s16 = sadd.f32 %s1191_s15, %s840_s0 }
 0x26c   :  { %s1193_s3 = spop %1192 }
 0x26d   :  { %883 = sst [smem:[#allocation5]] %s881_s16  ;;  %s935_s17 = sadd.s32 %s1193_s3, %s884_s1 }
 0x26e   :  { %937 = sst [smem:[#allocation7]] %s935_s17 }
 0x26f PF:  { %940 = sbr.rel (%p1491_p5) target bundleno = 873 (0x369), region = 29  ;;  %s941_s18 = sld [smem:[#allocation5]] (!%p1491_p5) }
 0x270   :  { %s985_s19 = sld [smem:[#allocation7]] (!%p1491_p5) }
 0x274   :  { %v1311_v15 = vmov 0   ;;  %vm2414_vm10 = vcmp.ne.s32.totalorder %v1415_v34, %v1420_v35  ;;  %vm2415_vm5 = vcmp.ne.s32.totalorder %v1428_v37, %v1420_v35  ;;  %vm2416_vm0 = vcmp.ne.s32.totalorder %v1413_v33, %v1420_v35  ;;  %v2427_v54 = vld [vmem:[#allocation11_spill] sm:$0xff]  ;;  %v2429_v10 = vld [vmem:[#allocation13_spill] sm:$0xff]  ;;  %v2431_v27 = vld [vmem:[#allocation12_spill] sm:$0xff] }
 0x275   :  { %v986_v1 = vsel %vm2414_vm10, 1, %v1311_v15  ;;  %v987_v26 = vsel %vm2415_vm5, 1, %v1311_v15  ;;  %v988_v46 = vsel %vm2416_vm0, 1, %v1311_v15  ;;  %vm2417_vm2 = vcmp.ne.s32.totalorder %v1426_v36, %v1420_v35  ;;  %v2433_v53 = vld [vmem:[#allocation14_spill] sm:$0xff]  ;;  %v2434_v7 = vld [vmem:[#allocation16_spill] sm:$0xff] }
 0x276   :  { %v989_v32 = vsel %vm2417_vm2, 1, %v1311_v15  ;;  %vm2418_vm12 = vcmp.ne.s32.totalorder %v1436_v39, %v1420_v35  ;;  %vm2419_vm13 = vcmp.ne.s32.totalorder %v1434_v38, %v1420_v35  ;;  %vm2420_vm15 = vcmp.ne.s32.totalorder %v1444_v41, %v1420_v35 }
 0x277   :  { %v990_v56 = vsel %vm2418_vm12, 1, %v1311_v15  ;;  %v991_v20 = vsel %vm2419_vm13, 1, %v1311_v15  ;;  %v992_v6 = vsel %vm2420_vm15, 1, %v1311_v15  ;;  %vm2421_vm1 = vcmp.ne.s32.totalorder %v1442_v40, %v1420_v35 }
 0x278   :  { %v993_v62 = vsel %vm2421_vm1, 1, %v1311_v15  ;;  %vm2422_vm8 = vcmp.ne.s32.totalorder %v1448_v43, %v1420_v35  ;;  %vm2423_vm11 = vcmp.ne.s32.totalorder %v1446_v42, %v1420_v35  ;;  %vm2424_vm3 = vcmp.ne.s32.totalorder %v1452_v45, %v1420_v35 }
 0x279   :  { %v994_v60 = vsel %vm2422_vm8, 1, %v1311_v15  ;;  %v995_v58 = vsel %vm2423_vm11, 1, %v1311_v15  ;;  %v996_v52 = vsel %vm2424_vm3, 1, %v1311_v15  ;;  %vm2425_vm4 = vcmp.ne.s32.totalorder %v1450_v44, %v1420_v35 }
 0x27a   :  { %v997_v0 = vsel %vm2425_vm4, 1, %v1311_v15  ;;  %v1002_v3 = vadd.s32 %v990_v56, %v986_v1  ;;  %v1003_v63 = vadd.s32 %v991_v20, %v987_v26  ;;  %v1004_v31 = vadd.s32 %v992_v6, %v988_v46  ;;  %v2435_v46 = vld [vmem:[#allocation15_spill] sm:$0xff] }
 0x27b   :  { %v1005_v28 = vadd.s32 %v993_v62, %v989_v32  ;;  %vm2426_vm6 = vcmp.ne.s32.totalorder %v1456_v47, %v1420_v35  ;;  %vm2428_vm9 = vcmp.ne.s32.totalorder %v2427_v54, %v1420_v35  ;;  %vm2430_vm7 = vcmp.ne.s32.totalorder %v2429_v10, %v1420_v35 }
 0x27c   :  { %v998_v8 = vsel %vm2426_vm6, 1, %v1311_v15  ;;  %v999_v9 = vsel %vm2428_vm9, 1, %v1311_v15  ;;  %v1000_v2 = vsel %vm2430_vm7, 1, %v1311_v15  ;;  %vm2432_vm14 = vcmp.ne.s32.totalorder %v2431_v27, %v1420_v35 }
 0x27d   :  { %v1001_v25 = vsel %vm2432_vm14, 1, %v1311_v15  ;;  %v1006_v30 = vadd.s32 %v1002_v3, %v994_v60  ;;  %v1007_v51 = vadd.s32 %v1003_v63, %v995_v58  ;;  %v1008_v49 = vadd.s32 %v1004_v31, %v996_v52 }
 0x27e   :  { %v1009_v14 = vadd.s32 %v1005_v28, %v997_v0  ;;  %v942_v57 = vsel %vm2414_vm10, %v2433_v53, 0.0  ;;  %v943_v4 = vsel %vm2415_vm5, %v2434_v7, 0.0  ;;  %v944_v22 = vsel %vm2416_vm0, %v1614_v11, 0.0 }
 0x27f   :  { %v1010_v19 = vadd.s32 %v1006_v30, %v998_v8  ;;  %v1011_v61 = vadd.s32 %v1007_v51, %v999_v9  ;;  %v1012_v29 = vadd.s32 %v1008_v49, %v1000_v2  ;;  %v958_v26 = vadd.f32 %v943_v4, %v942_v57 }
 0x280   :  { %v1013_v55 = vadd.s32 %v1009_v14, %v1001_v25  ;;  %v945_v34 = vsel %vm2417_vm2, %v2435_v46, 0.0  ;;  %v946_v56 = vsel %vm2418_vm12, %v1727_v5, 0.0  ;;  %v947_v33 = vsel %vm2419_vm13, %v1750_v23, 0.0 }
 0x281   :  { %v1014_v15 = vadd.s32 %v1011_v61, %v1010_v19  ;;  %v959_v37 = vadd.f32 %v958_v26, %v944_v22  ;;  %v948_v36 = vsel %vm2420_vm15, %v1712_v17, 0.0  ;;  %v949_v39 = vsel %vm2421_vm1, %v1738_v13, 0.0 }
 0x282   :  { %v1015_v1 = vadd.s32 %v1013_v55, %v1012_v29  ;;  %v950_v38 = vsel %vm2422_vm8, %v1651_v24, 0.0  ;;  %v951_v41 = vsel %vm2423_vm11, %v1706_v59, 0.0  ;;  %v952_v40 = vsel %vm2424_vm3, %v1622_v21, 0.0 }
 0x283   :  { %v960_v62 = vadd.f32 %v959_v37, %v945_v34  ;;  %v953_v43 = vsel %vm2425_vm4, %v1681_v12, 0.0  ;;  %v954_v0 = vsel %vm2426_vm6, %v1732_v18, 0.0  ;;  %v955_v59 = vsel %vm2428_vm9, %v1756_v50, 0.0 }
 0x284   :  { %v1016_v32 = vadd.s32 %v1015_v1, %v1014_v15  ;;  %v956_v21 = vsel %vm2430_vm7, %v1720_v16, 0.0  ;;  %v957_v12 = vsel %vm2432_vm14, %v1745_v48, 0.0 }
 0x285   :  { %v961_v60 = vadd.f32 %v960_v62, %v946_v56 }
 0x286   :  { %v1018_v20 = vshrl.u32 %v1016_v32, 16  ;;  %v1017_v6 = vand.u32 65535, %v1016_v32 }
 0x287   :  { %v962_v52 = vadd.f32 %v961_v60, %v947_v33 }
 0x288   :  { %v1020_v11 = vcvt.s32.f32 %v1018_v20  ;;  %v1019_v58 = vcvt.s32.f32 %v1017_v6 }
 0x289   :  { %v963_v5 = vadd.f32 %v962_v52, %v948_v36 }
 0x28a   :  { %1023 = vadd.xlane.f32.xlu0 %v1020_v11 }
 0x28b   :  { %v964_v23 = vadd.f32 %v963_v5, %v949_v39 }
 0x28d   :  { %v965_v17 = vadd.f32 %v964_v23, %v950_v38 }
 0x28e   :  { %1021 = vadd.xlane.f32.xlu0 %v1019_v58 }
 0x28f   :  { %v966_v13 = vadd.f32 %v965_v17, %v951_v41 }
 0x291   :  { %v967_v24 = vadd.f32 %v966_v13, %v952_v40 }
 0x293   :  { %v968_v42 = vadd.f32 %v967_v24, %v953_v43 }
 0x295   :  { %v969_v45 = vadd.f32 %v968_v42, %v954_v0 }
 0x297   :  { %v970_v44 = vadd.f32 %v969_v45, %v955_v59 }
 0x299   :  { %v971_v47 = vadd.f32 %v970_v44, %v956_v21 }
 0x29b   :  { %v972_v18 = vadd.f32 %v971_v47, %v957_v12 }
 0x29d   :  { %973 = vadd.xlane.f32.xlu1 %v972_v18 }
 0x313   :  { %v1024_v3 = vpop.xlane.xlu0 %1023 }
 0x314   :  { %v1026_v63 = vcvt.f32.s32 %v1024_v3 }
 0x316   :  { %v1027_v28 = vshll.u32 %v1026_v63, 16 }
 0x317   :  { %v1022_v31 = vpop.xlane.xlu0 %1021 }
 0x318   :  { %v1025_v50 = vcvt.f32.s32 %v1022_v31 }
 0x31a   :  { %v1028_v8 = vadd.s32 %v1027_v28, %v1025_v50 }
 0x31c   :  { %v1029_v54 = vrot.slane %v1028_v8, 4 }
 0x31e   :  { %v1030_v9 = vadd.s32 %v1029_v54, %v1028_v8 }
 0x320   :  { %v1031_v10 = vrot.slane %v1030_v9, 2 }
 0x322   :  { %v1032_v30 = vadd.s32 %v1031_v10, %v1030_v9 }
 0x324   :  { %v1033_v35 = vrot.slane %v1032_v30, 1 }
 0x326   :  { %v974_v2 = vpop.xlane.xlu1 %973  ;;  %v1034_v14 = vadd.s32 %v1033_v35, %v1032_v30 }
 0x327   :  { %v975_v16 = vrot.slane %v974_v2, 4 }
 0x329   :  { %v976_v25 = vadd.f32 %v975_v16, %v974_v2 }
 0x32b   :  { %v977_v51 = vrot.slane %v976_v25, 2 }
 0x32d   :  { %v978_v49 = vadd.f32 %v977_v51, %v976_v25 }
 0x32f   :  { %v979_v48 = vrot.slane %v978_v49, 1 }
 0x331   :  { %v980_v27 = vadd.f32 %v979_v48, %v978_v49 }
 0x333   :  { %1194 = vpush %v980_v27 }
 0x334   :  { %1196 = vpush %v1034_v14 }
 0x364   :  { %s1195_s2 = spop %1194 }
 0x365   :  { %s982_s4 = sadd.f32 %s1195_s2, %s941_s18  ;;  %s1197_s20 = spop %1196 }
 0x366   :  { %s1036_s21 = sadd.s32 %s1197_s20, %s985_s19 }
 0x367   :  { %984 = sst [smem:[#allocation5]] %s982_s4 }
 0x368   :  { %1038 = sst [smem:[#allocation7]] %s1036_s21 }
 0x369 PF:  { %s1312_s22 = smov [#allocation5]   ;;  %s1313_s25 = smov [#allocation7]  }
 0x36a   :  { %1046 = dma.smem_to_hbm %s1312_s22, 16, %s2273_s6, [#allocation6]  }
 0x36b   :  { %1054 = dma.smem_to_hbm %s1313_s25, 16, %s2274_s7, [#allocation8]  }
 0x36c   :  { %1303 = dma.done.wait [#allocation6], 16  }
 0x36d   :  { %1304 = vsyncadd [#allocation6], 4294967280 }
 0x36e   :  { %1305 = dma.done.wait [#allocation8], 16  }
 0x36f   :  { %1306 = vsyncadd [#allocation8], 4294967280 }
 0x370   :  { %1061 = sfence }
 0x371   :  { %1062 = vsyncpa [#allocation6], 1 }
 0x372   :  { %1063 = vsyncpa [#allocation8], 1 }

</bundles_post_ra>
